<compile_context>
chip_gen: v7x
topology: tpu7x:2x2x1
jax: 0.10.0
libtpu: 0.0.40
codegen_flags: <defaults>
</compile_context>

<pallas_src>
import functools
import math

import jax
import jax.numpy as jnp
from jax.experimental import pallas as pl
from jax.experimental.pallas import tpu as pltpu


def _bilstm_kernel(x_ref, wih_ref, whh_ref, b_ref, wemb_ref, bemb_ref, out_ref, *, T, B):
    H2, _ = whh_ref.shape            # (2H, 8H)
    H = H2 // 2
    G = 4 * H                        # gates per direction, packed order [i, f, o, g]

    # Fused input projection for BOTH directions & ALL timesteps: one MXU matmul.
    proj = (jnp.dot(x_ref[...], wih_ref[...], preferred_element_type=jnp.float32)
            + b_ref[...])            # (T*B, 8H): [fwd i f o g | bwd i f o g]

    whh = whh_ref[...]               # (2H, 8H) block-diagonal, pre-packed in the wrapper

    def cell(gates, c):
        # packed gate order: i, f, o, g  -> one contiguous sigmoid slice + one tanh slice
        sig = jax.nn.sigmoid(gates[:, :3 * H])
        g = jnp.tanh(gates[:, 3 * H:])
        i, f, o = sig[:, :H], sig[:, H:2 * H], sig[:, 2 * H:]
        c_new = f * c + i * g
        h_new = o * jnp.tanh(c_new)
        return h_new, c_new

    h_cat = jnp.zeros((B, 2 * H), jnp.float32)   # [h_fwd | h_bwd]
    cf = jnp.zeros((B, H), jnp.float32)
    cb = jnp.zeros((B, H), jnp.float32)
    hs_f = [None] * T
    hs_b = [None] * T

    # T is static & small: plain Python loop -> all indices are compile-time constants.
    for s in range(T):
        tb = T - 1 - s
        # ONE MXU matmul covers both directions' recurrences (block-diagonal weight):
        #   rec[:, :4H] = h_fwd @ Whh_f^T ,  rec[:, 4H:] = h_bwd @ Whh_b^T
        rec = jnp.dot(h_cat, whh, preferred_element_type=jnp.float32)       # (B, 8H)
        gates_f = proj[s * B:(s + 1) * B, :G] + rec[:, :G]    # forward step, time s
        gates_b = proj[tb * B:(tb + 1) * B, G:] + rec[:, G:]  # backward step, time T-1-s
        hf, cf = cell(gates_f, cf)
        hb, cb = cell(gates_b, cb)
        hs_f[s] = hf
        hs_b[tb] = hb
        h_cat = jnp.concatenate([hf, hb], axis=1)

    # (T*B, 2H) slab of per-timestep [h_fwd | h_bwd], built with static concatenates.
    hs = jnp.concatenate(
        [jnp.concatenate([hs_f[t], hs_b[t]], axis=1) for t in range(T)], axis=0)

    # Single fused embedding matmul; output written as a lane-dense 2-D slab.
    out_ref[...] = (jnp.dot(hs, wemb_ref[...], preferred_element_type=jnp.float32)
                    + bemb_ref[...])


def _reorder_gates(w, axis):
    """PyTorch gate order [i, f, g, o] -> packed order [i, f, o, g] along `axis`."""
    H = w.shape[axis] // 4
    i_f = jax.lax.slice_in_dim(w, 0, 2 * H, axis=axis)
    g = jax.lax.slice_in_dim(w, 2 * H, 3 * H, axis=axis)
    o = jax.lax.slice_in_dim(w, 3 * H, 4 * H, axis=axis)
    return jnp.concatenate([i_f, o, g], axis=axis)


def bidirectional_forward(x, params):
    T, B, I = x.shape
    H = params["whh_f"].shape[1]
    OUT = params["wemb"].shape[0]

    # --- One-time weight packing / transposition OUTSIDE the kernel ---
    wih_f = _reorder_gates(params["wih_f"], 0)      # (4H, I)
    wih_b = _reorder_gates(params["wih_b"], 0)
    whh_f = _reorder_gates(params["whh_f"], 0)      # (4H, H)
    whh_b = _reorder_gates(params["whh_b"], 0)
    b_f = _reorder_gates(params["b_f"], 1)          # (1, 4H)
    b_b = _reorder_gates(params["b_b"], 1)

    wih_cat = jnp.concatenate([wih_f.T, wih_b.T], axis=1)                   # (I, 8H)
    b_cat = jnp.concatenate([b_f, b_b], axis=1)                             # (1, 8H)
    z = jnp.zeros((H, 4 * H), jnp.float32)
    whh_blk = jnp.concatenate(
        [jnp.concatenate([whh_f.T, z], axis=1),
         jnp.concatenate([z, whh_b.T], axis=1)], axis=0)                    # (2H, 8H)
    wemb_t = params["wemb"].T                                               # (2H, OUT)
    bemb = params["bemb"]                                                   # (1, OUT)

    x2 = x.reshape(T * B, I)                                                # flatten outside

    vmem = lambda: pl.BlockSpec(memory_space=pltpu.MemorySpace.VMEM)
    kernel = functools.partial(_bilstm_kernel, T=T, B=B)
    y = pl.pallas_call(
        kernel,
        out_shape=jax.ShapeDtypeStruct((T * B, OUT), jnp.float32),
        in_specs=[vmem() for _ in range(6)],
        out_specs=vmem(),
        compiler_params=pltpu.CompilerParams(vmem_limit_bytes=64 * 1024 * 1024),
    )(x2, wih_cat, whh_blk, b_cat, wemb_t, bemb)
    return y.reshape(T, B, OUT)


def init_params(key, inp, hidden, out):
    """Deterministic PyTorch-style init. Biases b_ih + b_hh are folded into one (1, 4H) bias."""
    k = 1.0 / math.sqrt(hidden)
    ke = 1.0 / math.sqrt(2 * hidden)
    keys = jax.random.split(key, 8)
    u = lambda kk, shape, lim: jax.random.uniform(kk, shape, jnp.float32, -lim, lim)
    return {
        "wih_f": u(keys[0], (4 * hidden, inp), k),
        "whh_f": u(keys[1], (4 * hidden, hidden), k),
        "b_f":   u(keys[2], (1, 4 * hidden), 2 * k),   # b_ih + b_hh combined
        "wih_b": u(keys[3], (4 * hidden, inp), k),
        "whh_b": u(keys[4], (4 * hidden, hidden), k),
        "b_b":   u(keys[5], (1, 4 * hidden), 2 * k),
        "wemb":  u(keys[6], (out, 2 * hidden), ke),
        "bemb":  u(keys[7], (1, out), ke),
    }


def reference_forward(x, p):
    """Pure-JAX reference (same semantics as PyTorch nn.LSTM bidirectional + nn.Linear)."""
    T, B, _ = x.shape
    H = p["whh_f"].shape[1]

    def run_dir(wih, whh, b, reverse):
        h = jnp.zeros((B, H), jnp.float32)
        c = jnp.zeros((B, H), jnp.float32)
        outs = [None] * T
        ts = range(T - 1, -1, -1) if reverse else range(T)
        for t in ts:
            gates = x[t] @ wih.T + h @ whh.T + b[0]
            i = jax.nn.sigmoid(gates[:, :H])
            f = jax.nn.sigmoid(gates[:, H:2 * H])
            g = jnp.tanh(gates[:, 2 * H:3 * H])
            o = jax.nn.sigmoid(gates[:, 3 * H:])
            c = f * c + i * g
            h = o * jnp.tanh(c)
            outs[t] = h
        return jnp.stack(outs)

    hf = run_dir(p["wih_f"], p["whh_f"], p["b_f"], False)
    hb = run_dir(p["wih_b"], p["whh_b"], p["b_b"], True)
    rec = jnp.concatenate([hf, hb], axis=-1)
    return rec @ p["wemb"].T + p["bemb"][0]


if __name__ == "__main__":
    T, B, INP, HIDDEN, OUT = 8, 2, 16, 32, 16

    key = jax.random.PRNGKey(0)
    kx, kp = jax.random.split(key)
    x = jax.random.normal(kx, (T, B, INP), jnp.float32)
    params = init_params(kp, INP, HIDDEN, OUT)

    y = bidirectional_forward(x, params)
    y = jax.block_until_ready(y)

    y_ref = reference_forward(x, params)
    assert y.shape == (T, B, OUT)
    assert jnp.allclose(y, y_ref, atol=1e-4, rtol=1e-4), "Pallas output mismatch vs reference"

    print("KERNEL_OK")
</pallas_src>

<mosaic_0001>
module attributes {stable_mosaic.version = 11 : i64} {
  func.func @_bilstm_kernel(%arg0: memref<16x16xf32, #tpu.memory_space<vmem>>, %arg1: memref<16x256xf32, #tpu.memory_space<vmem>>, %arg2: memref<64x256xf32, #tpu.memory_space<vmem>>, %arg3: memref<1x256xf32, #tpu.memory_space<vmem>>, %arg4: memref<64x16xf32, #tpu.memory_space<vmem>>, %arg5: memref<1x16xf32, #tpu.memory_space<vmem>>, %arg6: memref<16x16xf32, #tpu.memory_space<vmem>>) attributes {dimension_semantics = [], scalar_prefetch = 0 : i64, scratch_operands = 0 : i64, tpu.core_type = #tpu.core_type<tc>} {
    %c0 = arith.constant 0 : index
    %c0_0 = arith.constant 0 : index
    %0 = vector.load %arg0[%c0, %c0_0] : memref<16x16xf32, #tpu.memory_space<vmem>>, vector<16x16xf32>
    %c0_1 = arith.constant 0 : index
    %c0_2 = arith.constant 0 : index
    %1 = vector.load %arg1[%c0_1, %c0_2] : memref<16x256xf32, #tpu.memory_space<vmem>>, vector<16x256xf32>
    %cst = arith.constant dense<0.000000e+00> : vector<16x256xf32>
    %2 = tpu.matmul %0, %1, %cst {dimension_numbers = #tpu.dot_dimension_numbers<[1], [0], [0], [1], [0, 0, 1, 1], [], []>} : vector<16x16xf32>, vector<16x256xf32>, vector<16x256xf32> -> vector<16x256xf32>
    %c0_3 = arith.constant 0 : index
    %c0_4 = arith.constant 0 : index
    %3 = vector.load %arg3[%c0_3, %c0_4] : memref<1x256xf32, #tpu.memory_space<vmem>>, vector<1x256xf32>
    %4 = vector.broadcast %3 : vector<1x256xf32> to vector<16x256xf32>
    %5 = arith.addf %2, %4 : vector<16x256xf32>
    %c0_5 = arith.constant 0 : index
    %c0_6 = arith.constant 0 : index
    %6 = vector.load %arg2[%c0_5, %c0_6] : memref<64x256xf32, #tpu.memory_space<vmem>>, vector<64x256xf32>
    %cst_7 = arith.constant 0.000000e+00 : f32
    %7 = vector.broadcast %cst_7 : f32 to vector<2x64xf32>
    %cst_8 = arith.constant 0.000000e+00 : f32
    %8 = vector.broadcast %cst_8 : f32 to vector<2x32xf32>
    %cst_9 = arith.constant 0.000000e+00 : f32
    %9 = vector.broadcast %cst_9 : f32 to vector<2x32xf32>
    %cst_10 = arith.constant dense<0.000000e+00> : vector<2x256xf32>
    %10 = tpu.matmul %7, %6, %cst_10 {dimension_numbers = #tpu.dot_dimension_numbers<[1], [0], [0], [1], [0, 0, 1, 1], [], []>} : vector<2x64xf32>, vector<64x256xf32>, vector<2x256xf32> -> vector<2x256xf32>
    %11 = vector.extract_strided_slice %5 {offsets = [0, 0], sizes = [2, 128], strides = [1, 1]} : vector<16x256xf32> to vector<2x128xf32>
    %12 = vector.extract_strided_slice %10 {offsets = [0, 0], sizes = [2, 128], strides = [1, 1]} : vector<2x256xf32> to vector<2x128xf32>
    %13 = arith.addf %11, %12 : vector<2x128xf32>
    %14 = vector.extract_strided_slice %5 {offsets = [14, 128], sizes = [2, 128], strides = [1, 1]} : vector<16x256xf32> to vector<2x128xf32>
    %15 = vector.extract_strided_slice %10 {offsets = [0, 128], sizes = [2, 128], strides = [1, 1]} : vector<2x256xf32> to vector<2x128xf32>
    %16 = arith.addf %14, %15 : vector<2x128xf32>
    %17 = vector.extract_strided_slice %13 {offsets = [0, 0], sizes = [2, 96], strides = [1, 1]} : vector<2x128xf32> to vector<2x96xf32>
    %18 = arith.negf %17 : vector<2x96xf32>
    %19 = math.exp %18 : vector<2x96xf32>
    %cst_11 = arith.constant 1.000000e+00 : f32
    %20 = vector.broadcast %cst_11 : f32 to vector<2x96xf32>
    %21 = arith.addf %20, %19 : vector<2x96xf32>
    %22 = arith.divf %20, %21 : vector<2x96xf32>
    %23 = vector.extract_strided_slice %13 {offsets = [0, 96], sizes = [2, 32], strides = [1, 1]} : vector<2x128xf32> to vector<2x32xf32>
    %24 = math.tanh %23 : vector<2x32xf32>
    %25 = vector.extract_strided_slice %22 {offsets = [0, 0], sizes = [2, 32], strides = [1, 1]} : vector<2x96xf32> to vector<2x32xf32>
    %26 = vector.extract_strided_slice %22 {offsets = [0, 32], sizes = [2, 32], strides = [1, 1]} : vector<2x96xf32> to vector<2x32xf32>
    %27 = vector.extract_strided_slice %22 {offsets = [0, 64], sizes = [2, 32], strides = [1, 1]} : vector<2x96xf32> to vector<2x32xf32>
    %28 = arith.mulf %26, %8 : vector<2x32xf32>
    %29 = arith.mulf %25, %24 : vector<2x32xf32>
    %30 = arith.addf %28, %29 : vector<2x32xf32>
    %31 = math.tanh %30 : vector<2x32xf32>
    %32 = arith.mulf %27, %31 : vector<2x32xf32>
    %33 = vector.extract_strided_slice %16 {offsets = [0, 0], sizes = [2, 96], strides = [1, 1]} : vector<2x128xf32> to vector<2x96xf32>
    %34 = arith.negf %33 : vector<2x96xf32>
    %35 = math.exp %34 : vector<2x96xf32>
    %cst_12 = arith.constant 1.000000e+00 : f32
    %36 = vector.broadcast %cst_12 : f32 to vector<2x96xf32>
    %37 = arith.addf %36, %35 : vector<2x96xf32>
    %38 = arith.divf %36, %37 : vector<2x96xf32>
    %39 = vector.extract_strided_slice %16 {offsets = [0, 96], sizes = [2, 32], strides = [1, 1]} : vector<2x128xf32> to vector<2x32xf32>
    %40 = math.tanh %39 : vector<2x32xf32>
    %41 = vector.extract_strided_slice %38 {offsets = [0, 0], sizes = [2, 32], strides = [1, 1]} : vector<2x96xf32> to vector<2x32xf32>
    %42 = vector.extract_strided_slice %38 {offsets = [0, 32], sizes = [2, 32], strides = [1, 1]} : vector<2x96xf32> to vector<2x32xf32>
    %43 = vector.extract_strided_slice %38 {offsets = [0, 64], sizes = [2, 32], strides = [1, 1]} : vector<2x96xf32> to vector<2x32xf32>
    %44 = arith.mulf %42, %9 : vector<2x32xf32>
    %45 = arith.mulf %41, %40 : vector<2x32xf32>
    %46 = arith.addf %44, %45 : vector<2x32xf32>
    %47 = math.tanh %46 : vector<2x32xf32>
    %48 = arith.mulf %43, %47 : vector<2x32xf32>
    %49 = tpu.concatenate %32, %48 in 1 : vector<2x32xf32>, vector<2x32xf32> -> vector<2x64xf32>
    %cst_13 = arith.constant dense<0.000000e+00> : vector<2x256xf32>
    %50 = tpu.matmul %49, %6, %cst_13 {dimension_numbers = #tpu.dot_dimension_numbers<[1], [0], [0], [1], [0, 0, 1, 1], [], []>} : vector<2x64xf32>, vector<64x256xf32>, vector<2x256xf32> -> vector<2x256xf32>
    %51 = vector.extract_strided_slice %5 {offsets = [2, 0], sizes = [2, 128], strides = [1, 1]} : vector<16x256xf32> to vector<2x128xf32>
    %52 = vector.extract_strided_slice %50 {offsets = [0, 0], sizes = [2, 128], strides = [1, 1]} : vector<2x256xf32> to vector<2x128xf32>
    %53 = arith.addf %51, %52 : vector<2x128xf32>
    %54 = vector.extract_strided_slice %5 {offsets = [12, 128], sizes = [2, 128], strides = [1, 1]} : vector<16x256xf32> to vector<2x128xf32>
    %55 = vector.extract_strided_slice %50 {offsets = [0, 128], sizes = [2, 128], strides = [1, 1]} : vector<2x256xf32> to vector<2x128xf32>
    %56 = arith.addf %54, %55 : vector<2x128xf32>
    %57 = vector.extract_strided_slice %53 {offsets = [0, 0], sizes = [2, 96], strides = [1, 1]} : vector<2x128xf32> to vector<2x96xf32>
    %58 = arith.negf %57 : vector<2x96xf32>
    %59 = math.exp %58 : vector<2x96xf32>
    %cst_14 = arith.constant 1.000000e+00 : f32
    %60 = vector.broadcast %cst_14 : f32 to vector<2x96xf32>
    %61 = arith.addf %60, %59 : vector<2x96xf32>
    %62 = arith.divf %60, %61 : vector<2x96xf32>
    %63 = vector.extract_strided_slice %53 {offsets = [0, 96], sizes = [2, 32], strides = [1, 1]} : vector<2x128xf32> to vector<2x32xf32>
    %64 = math.tanh %63 : vector<2x32xf32>
    %65 = vector.extract_strided_slice %62 {offsets = [0, 0], sizes = [2, 32], strides = [1, 1]} : vector<2x96xf32> to vector<2x32xf32>
    %66 = vector.extract_strided_slice %62 {offsets = [0, 32], sizes = [2, 32], strides = [1, 1]} : vector<2x96xf32> to vector<2x32xf32>
    %67 = vector.extract_strided_slice %62 {offsets = [0, 64], sizes = [2, 32], strides = [1, 1]} : vector<2x96xf32> to vector<2x32xf32>
    %68 = arith.mulf %66, %30 : vector<2x32xf32>
    %69 = arith.mulf %65, %64 : vector<2x32xf32>
    %70 = arith.addf %68, %69 : vector<2x32xf32>
    %71 = math.tanh %70 : vector<2x32xf32>
    %72 = arith.mulf %67, %71 : vector<2x32xf32>
    %73 = vector.extract_strided_slice %56 {offsets = [0, 0], sizes = [2, 96], strides = [1, 1]} : vector<2x128xf32> to vector<2x96xf32>
    %74 = arith.negf %73 : vector<2x96xf32>
    %75 = math.exp %74 : vector<2x96xf32>
    %cst_15 = arith.constant 1.000000e+00 : f32
    %76 = vector.broadcast %cst_15 : f32 to vector<2x96xf32>
    %77 = arith.addf %76, %75 : vector<2x96xf32>
    %78 = arith.divf %76, %77 : vector<2x96xf32>
    %79 = vector.extract_strided_slice %56 {offsets = [0, 96], sizes = [2, 32], strides = [1, 1]} : vector<2x128xf32> to vector<2x32xf32>
    %80 = math.tanh %79 : vector<2x32xf32>
    %81 = vector.extract_strided_slice %78 {offsets = [0, 0], sizes = [2, 32], strides = [1, 1]} : vector<2x96xf32> to vector<2x32xf32>
    %82 = vector.extract_strided_slice %78 {offsets = [0, 32], sizes = [2, 32], strides = [1, 1]} : vector<2x96xf32> to vector<2x32xf32>
    %83 = vector.extract_strided_slice %78 {offsets = [0, 64], sizes = [2, 32], strides = [1, 1]} : vector<2x96xf32> to vector<2x32xf32>
    %84 = arith.mulf %82, %46 : vector<2x32xf32>
    %85 = arith.mulf %81, %80 : vector<2x32xf32>
    %86 = arith.addf %84, %85 : vector<2x32xf32>
    %87 = math.tanh %86 : vector<2x32xf32>
    %88 = arith.mulf %83, %87 : vector<2x32xf32>
    %89 = tpu.concatenate %72, %88 in 1 : vector<2x32xf32>, vector<2x32xf32> -> vector<2x64xf32>
    %cst_16 = arith.constant dense<0.000000e+00> : vector<2x256xf32>
    %90 = tpu.matmul %89, %6, %cst_16 {dimension_numbers = #tpu.dot_dimension_numbers<[1], [0], [0], [1], [0, 0, 1, 1], [], []>} : vector<2x64xf32>, vector<64x256xf32>, vector<2x256xf32> -> vector<2x256xf32>
    %91 = vector.extract_strided_slice %5 {offsets = [4, 0], sizes = [2, 128], strides = [1, 1]} : vector<16x256xf32> to vector<2x128xf32>
    %92 = vector.extract_strided_slice %90 {offsets = [0, 0], sizes = [2, 128], strides = [1, 1]} : vector<2x256xf32> to vector<2x128xf32>
    %93 = arith.addf %91, %92 : vector<2x128xf32>
    %94 = vector.extract_strided_slice %5 {offsets = [10, 128], sizes = [2, 128], strides = [1, 1]} : vector<16x256xf32> to vector<2x128xf32>
    %95 = vector.extract_strided_slice %90 {offsets = [0, 128], sizes = [2, 128], strides = [1, 1]} : vector<2x256xf32> to vector<2x128xf32>
    %96 = arith.addf %94, %95 : vector<2x128xf32>
    %97 = vector.extract_strided_slice %93 {offsets = [0, 0], sizes = [2, 96], strides = [1, 1]} : vector<2x128xf32> to vector<2x96xf32>
    %98 = arith.negf %97 : vector<2x96xf32>
    %99 = math.exp %98 : vector<2x96xf32>
    %cst_17 = arith.constant 1.000000e+00 : f32
    %100 = vector.broadcast %cst_17 : f32 to vector<2x96xf32>
    %101 = arith.addf %100, %99 : vector<2x96xf32>
    %102 = arith.divf %100, %101 : vector<2x96xf32>
    %103 = vector.extract_strided_slice %93 {offsets = [0, 96], sizes = [2, 32], strides = [1, 1]} : vector<2x128xf32> to vector<2x32xf32>
    %104 = math.tanh %103 : vector<2x32xf32>
    %105 = vector.extract_strided_slice %102 {offsets = [0, 0], sizes = [2, 32], strides = [1, 1]} : vector<2x96xf32> to vector<2x32xf32>
    %106 = vector.extract_strided_slice %102 {offsets = [0, 32], sizes = [2, 32], strides = [1, 1]} : vector<2x96xf32> to vector<2x32xf32>
    %107 = vector.extract_strided_slice %102 {offsets = [0, 64], sizes = [2, 32], strides = [1, 1]} : vector<2x96xf32> to vector<2x32xf32>
    %108 = arith.mulf %106, %70 : vector<2x32xf32>
    %109 = arith.mulf %105, %104 : vector<2x32xf32>
    %110 = arith.addf %108, %109 : vector<2x32xf32>
    %111 = math.tanh %110 : vector<2x32xf32>
    %112 = arith.mulf %107, %111 : vector<2x32xf32>
    %113 = vector.extract_strided_slice %96 {offsets = [0, 0], sizes = [2, 96], strides = [1, 1]} : vector<2x128xf32> to vector<2x96xf32>
    %114 = arith.negf %113 : vector<2x96xf32>
    %115 = math.exp %114 : vector<2x96xf32>
    %cst_18 = arith.constant 1.000000e+00 : f32
    %116 = vector.broadcast %cst_18 : f32 to vector<2x96xf32>
    %117 = arith.addf %116, %115 : vector<2x96xf32>
    %118 = arith.divf %116, %117 : vector<2x96xf32>
    %119 = vector.extract_strided_slice %96 {offsets = [0, 96], sizes = [2, 32], strides = [1, 1]} : vector<2x128xf32> to vector<2x32xf32>
    %120 = math.tanh %119 : vector<2x32xf32>
    %121 = vector.extract_strided_slice %118 {offsets = [0, 0], sizes = [2, 32], strides = [1, 1]} : vector<2x96xf32> to vector<2x32xf32>
    %122 = vector.extract_strided_slice %118 {offsets = [0, 32], sizes = [2, 32], strides = [1, 1]} : vector<2x96xf32> to vector<2x32xf32>
    %123 = vector.extract_strided_slice %118 {offsets = [0, 64], sizes = [2, 32], strides = [1, 1]} : vector<2x96xf32> to vector<2x32xf32>
    %124 = arith.mulf %122, %86 : vector<2x32xf32>
    %125 = arith.mulf %121, %120 : vector<2x32xf32>
    %126 = arith.addf %124, %125 : vector<2x32xf32>
    %127 = math.tanh %126 : vector<2x32xf32>
    %128 = arith.mulf %123, %127 : vector<2x32xf32>
    %129 = tpu.concatenate %112, %128 in 1 : vector<2x32xf32>, vector<2x32xf32> -> vector<2x64xf32>
    %cst_19 = arith.constant dense<0.000000e+00> : vector<2x256xf32>
    %130 = tpu.matmul %129, %6, %cst_19 {dimension_numbers = #tpu.dot_dimension_numbers<[1], [0], [0], [1], [0, 0, 1, 1], [], []>} : vector<2x64xf32>, vector<64x256xf32>, vector<2x256xf32> -> vector<2x256xf32>
    %131 = vector.extract_strided_slice %5 {offsets = [6, 0], sizes = [2, 128], strides = [1, 1]} : vector<16x256xf32> to vector<2x128xf32>
    %132 = vector.extract_strided_slice %130 {offsets = [0, 0], sizes = [2, 128], strides = [1, 1]} : vector<2x256xf32> to vector<2x128xf32>
    %133 = arith.addf %131, %132 : vector<2x128xf32>
    %134 = vector.extract_strided_slice %5 {offsets = [8, 128], sizes = [2, 128], strides = [1, 1]} : vector<16x256xf32> to vector<2x128xf32>
    %135 = vector.extract_strided_slice %130 {offsets = [0, 128], sizes = [2, 128], strides = [1, 1]} : vector<2x256xf32> to vector<2x128xf32>
    %136 = arith.addf %134, %135 : vector<2x128xf32>
    %137 = vector.extract_strided_slice %133 {offsets = [0, 0], sizes = [2, 96], strides = [1, 1]} : vector<2x128xf32> to vector<2x96xf32>
    %138 = arith.negf %137 : vector<2x96xf32>
    %139 = math.exp %138 : vector<2x96xf32>
    %cst_20 = arith.constant 1.000000e+00 : f32
    %140 = vector.broadcast %cst_20 : f32 to vector<2x96xf32>
    %141 = arith.addf %140, %139 : vector<2x96xf32>
    %142 = arith.divf %140, %141 : vector<2x96xf32>
    %143 = vector.extract_strided_slice %133 {offsets = [0, 96], sizes = [2, 32], strides = [1, 1]} : vector<2x128xf32> to vector<2x32xf32>
    %144 = math.tanh %143 : vector<2x32xf32>
    %145 = vector.extract_strided_slice %142 {offsets = [0, 0], sizes = [2, 32], strides = [1, 1]} : vector<2x96xf32> to vector<2x32xf32>
    %146 = vector.extract_strided_slice %142 {offsets = [0, 32], sizes = [2, 32], strides = [1, 1]} : vector<2x96xf32> to vector<2x32xf32>
    %147 = vector.extract_strided_slice %142 {offsets = [0, 64], sizes = [2, 32], strides = [1, 1]} : vector<2x96xf32> to vector<2x32xf32>
    %148 = arith.mulf %146, %110 : vector<2x32xf32>
    %149 = arith.mulf %145, %144 : vector<2x32xf32>
    %150 = arith.addf %148, %149 : vector<2x32xf32>
    %151 = math.tanh %150 : vector<2x32xf32>
    %152 = arith.mulf %147, %151 : vector<2x32xf32>
    %153 = vector.extract_strided_slice %136 {offsets = [0, 0], sizes = [2, 96], strides = [1, 1]} : vector<2x128xf32> to vector<2x96xf32>
    %154 = arith.negf %153 : vector<2x96xf32>
    %155 = math.exp %154 : vector<2x96xf32>
    %cst_21 = arith.constant 1.000000e+00 : f32
    %156 = vector.broadcast %cst_21 : f32 to vector<2x96xf32>
    %157 = arith.addf %156, %155 : vector<2x96xf32>
    %158 = arith.divf %156, %157 : vector<2x96xf32>
    %159 = vector.extract_strided_slice %136 {offsets = [0, 96], sizes = [2, 32], strides = [1, 1]} : vector<2x128xf32> to vector<2x32xf32>
    %160 = math.tanh %159 : vector<2x32xf32>
    %161 = vector.extract_strided_slice %158 {offsets = [0, 0], sizes = [2, 32], strides = [1, 1]} : vector<2x96xf32> to vector<2x32xf32>
    %162 = vector.extract_strided_slice %158 {offsets = [0, 32], sizes = [2, 32], strides = [1, 1]} : vector<2x96xf32> to vector<2x32xf32>
    %163 = vector.extract_strided_slice %158 {offsets = [0, 64], sizes = [2, 32], strides = [1, 1]} : vector<2x96xf32> to vector<2x32xf32>
    %164 = arith.mulf %162, %126 : vector<2x32xf32>
    %165 = arith.mulf %161, %160 : vector<2x32xf32>
    %166 = arith.addf %164, %165 : vector<2x32xf32>
    %167 = math.tanh %166 : vector<2x32xf32>
    %168 = arith.mulf %163, %167 : vector<2x32xf32>
    %169 = tpu.concatenate %152, %168 in 1 : vector<2x32xf32>, vector<2x32xf32> -> vector<2x64xf32>
    %cst_22 = arith.constant dense<0.000000e+00> : vector<2x256xf32>
    %170 = tpu.matmul %169, %6, %cst_22 {dimension_numbers = #tpu.dot_dimension_numbers<[1], [0], [0], [1], [0, 0, 1, 1], [], []>} : vector<2x64xf32>, vector<64x256xf32>, vector<2x256xf32> -> vector<2x256xf32>
    %171 = vector.extract_strided_slice %5 {offsets = [8, 0], sizes = [2, 128], strides = [1, 1]} : vector<16x256xf32> to vector<2x128xf32>
    %172 = vector.extract_strided_slice %170 {offsets = [0, 0], sizes = [2, 128], strides = [1, 1]} : vector<2x256xf32> to vector<2x128xf32>
    %173 = arith.addf %171, %172 : vector<2x128xf32>
    %174 = vector.extract_strided_slice %5 {offsets = [6, 128], sizes = [2, 128], strides = [1, 1]} : vector<16x256xf32> to vector<2x128xf32>
    %175 = vector.extract_strided_slice %170 {offsets = [0, 128], sizes = [2, 128], strides = [1, 1]} : vector<2x256xf32> to vector<2x128xf32>
    %176 = arith.addf %174, %175 : vector<2x128xf32>
    %177 = vector.extract_strided_slice %173 {offsets = [0, 0], sizes = [2, 96], strides = [1, 1]} : vector<2x128xf32> to vector<2x96xf32>
    %178 = arith.negf %177 : vector<2x96xf32>
    %179 = math.exp %178 : vector<2x96xf32>
    %cst_23 = arith.constant 1.000000e+00 : f32
    %180 = vector.broadcast %cst_23 : f32 to vector<2x96xf32>
    %181 = arith.addf %180, %179 : vector<2x96xf32>
    %182 = arith.divf %180, %181 : vector<2x96xf32>
    %183 = vector.extract_strided_slice %173 {offsets = [0, 96], sizes = [2, 32], strides = [1, 1]} : vector<2x128xf32> to vector<2x32xf32>
    %184 = math.tanh %183 : vector<2x32xf32>
    %185 = vector.extract_strided_slice %182 {offsets = [0, 0], sizes = [2, 32], strides = [1, 1]} : vector<2x96xf32> to vector<2x32xf32>
    %186 = vector.extract_strided_slice %182 {offsets = [0, 32], sizes = [2, 32], strides = [1, 1]} : vector<2x96xf32> to vector<2x32xf32>
    %187 = vector.extract_strided_slice %182 {offsets = [0, 64], sizes = [2, 32], strides = [1, 1]} : vector<2x96xf32> to vector<2x32xf32>
    %188 = arith.mulf %186, %150 : vector<2x32xf32>
    %189 = arith.mulf %185, %184 : vector<2x32xf32>
    %190 = arith.addf %188, %189 : vector<2x32xf32>
    %191 = math.tanh %190 : vector<2x32xf32>
    %192 = arith.mulf %187, %191 : vector<2x32xf32>
    %193 = vector.extract_strided_slice %176 {offsets = [0, 0], sizes = [2, 96], strides = [1, 1]} : vector<2x128xf32> to vector<2x96xf32>
    %194 = arith.negf %193 : vector<2x96xf32>
    %195 = math.exp %194 : vector<2x96xf32>
    %cst_24 = arith.constant 1.000000e+00 : f32
    %196 = vector.broadcast %cst_24 : f32 to vector<2x96xf32>
    %197 = arith.addf %196, %195 : vector<2x96xf32>
    %198 = arith.divf %196, %197 : vector<2x96xf32>
    %199 = vector.extract_strided_slice %176 {offsets = [0, 96], sizes = [2, 32], strides = [1, 1]} : vector<2x128xf32> to vector<2x32xf32>
    %200 = math.tanh %199 : vector<2x32xf32>
    %201 = vector.extract_strided_slice %198 {offsets = [0, 0], sizes = [2, 32], strides = [1, 1]} : vector<2x96xf32> to vector<2x32xf32>
    %202 = vector.extract_strided_slice %198 {offsets = [0, 32], sizes = [2, 32], strides = [1, 1]} : vector<2x96xf32> to vector<2x32xf32>
    %203 = vector.extract_strided_slice %198 {offsets = [0, 64], sizes = [2, 32], strides = [1, 1]} : vector<2x96xf32> to vector<2x32xf32>
    %204 = arith.mulf %202, %166 : vector<2x32xf32>
    %205 = arith.mulf %201, %200 : vector<2x32xf32>
    %206 = arith.addf %204, %205 : vector<2x32xf32>
    %207 = math.tanh %206 : vector<2x32xf32>
    %208 = arith.mulf %203, %207 : vector<2x32xf32>
    %209 = tpu.concatenate %192, %208 in 1 : vector<2x32xf32>, vector<2x32xf32> -> vector<2x64xf32>
    %cst_25 = arith.constant dense<0.000000e+00> : vector<2x256xf32>
    %210 = tpu.matmul %209, %6, %cst_25 {dimension_numbers = #tpu.dot_dimension_numbers<[1], [0], [0], [1], [0, 0, 1, 1], [], []>} : vector<2x64xf32>, vector<64x256xf32>, vector<2x256xf32> -> vector<2x256xf32>
    %211 = vector.extract_strided_slice %5 {offsets = [10, 0], sizes = [2, 128], strides = [1, 1]} : vector<16x256xf32> to vector<2x128xf32>
    %212 = vector.extract_strided_slice %210 {offsets = [0, 0], sizes = [2, 128], strides = [1, 1]} : vector<2x256xf32> to vector<2x128xf32>
    %213 = arith.addf %211, %212 : vector<2x128xf32>
    %214 = vector.extract_strided_slice %5 {offsets = [4, 128], sizes = [2, 128], strides = [1, 1]} : vector<16x256xf32> to vector<2x128xf32>
    %215 = vector.extract_strided_slice %210 {offsets = [0, 128], sizes = [2, 128], strides = [1, 1]} : vector<2x256xf32> to vector<2x128xf32>
    %216 = arith.addf %214, %215 : vector<2x128xf32>
    %217 = vector.extract_strided_slice %213 {offsets = [0, 0], sizes = [2, 96], strides = [1, 1]} : vector<2x128xf32> to vector<2x96xf32>
    %218 = arith.negf %217 : vector<2x96xf32>
    %219 = math.exp %218 : vector<2x96xf32>
    %cst_26 = arith.constant 1.000000e+00 : f32
    %220 = vector.broadcast %cst_26 : f32 to vector<2x96xf32>
    %221 = arith.addf %220, %219 : vector<2x96xf32>
    %222 = arith.divf %220, %221 : vector<2x96xf32>
    %223 = vector.extract_strided_slice %213 {offsets = [0, 96], sizes = [2, 32], strides = [1, 1]} : vector<2x128xf32> to vector<2x32xf32>
    %224 = math.tanh %223 : vector<2x32xf32>
    %225 = vector.extract_strided_slice %222 {offsets = [0, 0], sizes = [2, 32], strides = [1, 1]} : vector<2x96xf32> to vector<2x32xf32>
    %226 = vector.extract_strided_slice %222 {offsets = [0, 32], sizes = [2, 32], strides = [1, 1]} : vector<2x96xf32> to vector<2x32xf32>
    %227 = vector.extract_strided_slice %222 {offsets = [0, 64], sizes = [2, 32], strides = [1, 1]} : vector<2x96xf32> to vector<2x32xf32>
    %228 = arith.mulf %226, %190 : vector<2x32xf32>
    %229 = arith.mulf %225, %224 : vector<2x32xf32>
    %230 = arith.addf %228, %229 : vector<2x32xf32>
    %231 = math.tanh %230 : vector<2x32xf32>
    %232 = arith.mulf %227, %231 : vector<2x32xf32>
    %233 = vector.extract_strided_slice %216 {offsets = [0, 0], sizes = [2, 96], strides = [1, 1]} : vector<2x128xf32> to vector<2x96xf32>
    %234 = arith.negf %233 : vector<2x96xf32>
    %235 = math.exp %234 : vector<2x96xf32>
    %cst_27 = arith.constant 1.000000e+00 : f32
    %236 = vector.broadcast %cst_27 : f32 to vector<2x96xf32>
    %237 = arith.addf %236, %235 : vector<2x96xf32>
    %238 = arith.divf %236, %237 : vector<2x96xf32>
    %239 = vector.extract_strided_slice %216 {offsets = [0, 96], sizes = [2, 32], strides = [1, 1]} : vector<2x128xf32> to vector<2x32xf32>
    %240 = math.tanh %239 : vector<2x32xf32>
    %241 = vector.extract_strided_slice %238 {offsets = [0, 0], sizes = [2, 32], strides = [1, 1]} : vector<2x96xf32> to vector<2x32xf32>
    %242 = vector.extract_strided_slice %238 {offsets = [0, 32], sizes = [2, 32], strides = [1, 1]} : vector<2x96xf32> to vector<2x32xf32>
    %243 = vector.extract_strided_slice %238 {offsets = [0, 64], sizes = [2, 32], strides = [1, 1]} : vector<2x96xf32> to vector<2x32xf32>
    %244 = arith.mulf %242, %206 : vector<2x32xf32>
    %245 = arith.mulf %241, %240 : vector<2x32xf32>
    %246 = arith.addf %244, %245 : vector<2x32xf32>
    %247 = math.tanh %246 : vector<2x32xf32>
    %248 = arith.mulf %243, %247 : vector<2x32xf32>
    %249 = tpu.concatenate %232, %248 in 1 : vector<2x32xf32>, vector<2x32xf32> -> vector<2x64xf32>
    %cst_28 = arith.constant dense<0.000000e+00> : vector<2x256xf32>
    %250 = tpu.matmul %249, %6, %cst_28 {dimension_numbers = #tpu.dot_dimension_numbers<[1], [0], [0], [1], [0, 0, 1, 1], [], []>} : vector<2x64xf32>, vector<64x256xf32>, vector<2x256xf32> -> vector<2x256xf32>
    %251 = vector.extract_strided_slice %5 {offsets = [12, 0], sizes = [2, 128], strides = [1, 1]} : vector<16x256xf32> to vector<2x128xf32>
    %252 = vector.extract_strided_slice %250 {offsets = [0, 0], sizes = [2, 128], strides = [1, 1]} : vector<2x256xf32> to vector<2x128xf32>
    %253 = arith.addf %251, %252 : vector<2x128xf32>
    %254 = vector.extract_strided_slice %5 {offsets = [2, 128], sizes = [2, 128], strides = [1, 1]} : vector<16x256xf32> to vector<2x128xf32>
    %255 = vector.extract_strided_slice %250 {offsets = [0, 128], sizes = [2, 128], strides = [1, 1]} : vector<2x256xf32> to vector<2x128xf32>
    %256 = arith.addf %254, %255 : vector<2x128xf32>
    %257 = vector.extract_strided_slice %253 {offsets = [0, 0], sizes = [2, 96], strides = [1, 1]} : vector<2x128xf32> to vector<2x96xf32>
    %258 = arith.negf %257 : vector<2x96xf32>
    %259 = math.exp %258 : vector<2x96xf32>
    %cst_29 = arith.constant 1.000000e+00 : f32
    %260 = vector.broadcast %cst_29 : f32 to vector<2x96xf32>
    %261 = arith.addf %260, %259 : vector<2x96xf32>
    %262 = arith.divf %260, %261 : vector<2x96xf32>
    %263 = vector.extract_strided_slice %253 {offsets = [0, 96], sizes = [2, 32], strides = [1, 1]} : vector<2x128xf32> to vector<2x32xf32>
    %264 = math.tanh %263 : vector<2x32xf32>
    %265 = vector.extract_strided_slice %262 {offsets = [0, 0], sizes = [2, 32], strides = [1, 1]} : vector<2x96xf32> to vector<2x32xf32>
    %266 = vector.extract_strided_slice %262 {offsets = [0, 32], sizes = [2, 32], strides = [1, 1]} : vector<2x96xf32> to vector<2x32xf32>
    %267 = vector.extract_strided_slice %262 {offsets = [0, 64], sizes = [2, 32], strides = [1, 1]} : vector<2x96xf32> to vector<2x32xf32>
    %268 = arith.mulf %266, %230 : vector<2x32xf32>
    %269 = arith.mulf %265, %264 : vector<2x32xf32>
    %270 = arith.addf %268, %269 : vector<2x32xf32>
    %271 = math.tanh %270 : vector<2x32xf32>
    %272 = arith.mulf %267, %271 : vector<2x32xf32>
    %273 = vector.extract_strided_slice %256 {offsets = [0, 0], sizes = [2, 96], strides = [1, 1]} : vector<2x128xf32> to vector<2x96xf32>
    %274 = arith.negf %273 : vector<2x96xf32>
    %275 = math.exp %274 : vector<2x96xf32>
    %cst_30 = arith.constant 1.000000e+00 : f32
    %276 = vector.broadcast %cst_30 : f32 to vector<2x96xf32>
    %277 = arith.addf %276, %275 : vector<2x96xf32>
    %278 = arith.divf %276, %277 : vector<2x96xf32>
    %279 = vector.extract_strided_slice %256 {offsets = [0, 96], sizes = [2, 32], strides = [1, 1]} : vector<2x128xf32> to vector<2x32xf32>
    %280 = math.tanh %279 : vector<2x32xf32>
    %281 = vector.extract_strided_slice %278 {offsets = [0, 0], sizes = [2, 32], strides = [1, 1]} : vector<2x96xf32> to vector<2x32xf32>
    %282 = vector.extract_strided_slice %278 {offsets = [0, 32], sizes = [2, 32], strides = [1, 1]} : vector<2x96xf32> to vector<2x32xf32>
    %283 = vector.extract_strided_slice %278 {offsets = [0, 64], sizes = [2, 32], strides = [1, 1]} : vector<2x96xf32> to vector<2x32xf32>
    %284 = arith.mulf %282, %246 : vector<2x32xf32>
    %285 = arith.mulf %281, %280 : vector<2x32xf32>
    %286 = arith.addf %284, %285 : vector<2x32xf32>
    %287 = math.tanh %286 : vector<2x32xf32>
    %288 = arith.mulf %283, %287 : vector<2x32xf32>
    %289 = tpu.concatenate %272, %288 in 1 : vector<2x32xf32>, vector<2x32xf32> -> vector<2x64xf32>
    %cst_31 = arith.constant dense<0.000000e+00> : vector<2x256xf32>
    %290 = tpu.matmul %289, %6, %cst_31 {dimension_numbers = #tpu.dot_dimension_numbers<[1], [0], [0], [1], [0, 0, 1, 1], [], []>} : vector<2x64xf32>, vector<64x256xf32>, vector<2x256xf32> -> vector<2x256xf32>
    %291 = vector.extract_strided_slice %5 {offsets = [14, 0], sizes = [2, 128], strides = [1, 1]} : vector<16x256xf32> to vector<2x128xf32>
    %292 = vector.extract_strided_slice %290 {offsets = [0, 0], sizes = [2, 128], strides = [1, 1]} : vector<2x256xf32> to vector<2x128xf32>
    %293 = arith.addf %291, %292 : vector<2x128xf32>
    %294 = vector.extract_strided_slice %5 {offsets = [0, 128], sizes = [2, 128], strides = [1, 1]} : vector<16x256xf32> to vector<2x128xf32>
    %295 = vector.extract_strided_slice %290 {offsets = [0, 128], sizes = [2, 128], strides = [1, 1]} : vector<2x256xf32> to vector<2x128xf32>
    %296 = arith.addf %294, %295 : vector<2x128xf32>
    %297 = vector.extract_strided_slice %293 {offsets = [0, 0], sizes = [2, 96], strides = [1, 1]} : vector<2x128xf32> to vector<2x96xf32>
    %298 = arith.negf %297 : vector<2x96xf32>
    %299 = math.exp %298 : vector<2x96xf32>
    %cst_32 = arith.constant 1.000000e+00 : f32
    %300 = vector.broadcast %cst_32 : f32 to vector<2x96xf32>
    %301 = arith.addf %300, %299 : vector<2x96xf32>
    %302 = arith.divf %300, %301 : vector<2x96xf32>
    %303 = vector.extract_strided_slice %293 {offsets = [0, 96], sizes = [2, 32], strides = [1, 1]} : vector<2x128xf32> to vector<2x32xf32>
    %304 = math.tanh %303 : vector<2x32xf32>
    %305 = vector.extract_strided_slice %302 {offsets = [0, 0], sizes = [2, 32], strides = [1, 1]} : vector<2x96xf32> to vector<2x32xf32>
    %306 = vector.extract_strided_slice %302 {offsets = [0, 32], sizes = [2, 32], strides = [1, 1]} : vector<2x96xf32> to vector<2x32xf32>
    %307 = vector.extract_strided_slice %302 {offsets = [0, 64], sizes = [2, 32], strides = [1, 1]} : vector<2x96xf32> to vector<2x32xf32>
    %308 = arith.mulf %306, %270 : vector<2x32xf32>
    %309 = arith.mulf %305, %304 : vector<2x32xf32>
    %310 = arith.addf %308, %309 : vector<2x32xf32>
    %311 = math.tanh %310 : vector<2x32xf32>
    %312 = arith.mulf %307, %311 : vector<2x32xf32>
    %313 = vector.extract_strided_slice %296 {offsets = [0, 0], sizes = [2, 96], strides = [1, 1]} : vector<2x128xf32> to vector<2x96xf32>
    %314 = arith.negf %313 : vector<2x96xf32>
    %315 = math.exp %314 : vector<2x96xf32>
    %cst_33 = arith.constant 1.000000e+00 : f32
    %316 = vector.broadcast %cst_33 : f32 to vector<2x96xf32>
    %317 = arith.addf %316, %315 : vector<2x96xf32>
    %318 = arith.divf %316, %317 : vector<2x96xf32>
    %319 = vector.extract_strided_slice %296 {offsets = [0, 96], sizes = [2, 32], strides = [1, 1]} : vector<2x128xf32> to vector<2x32xf32>
    %320 = math.tanh %319 : vector<2x32xf32>
    %321 = vector.extract_strided_slice %318 {offsets = [0, 0], sizes = [2, 32], strides = [1, 1]} : vector<2x96xf32> to vector<2x32xf32>
    %322 = vector.extract_strided_slice %318 {offsets = [0, 32], sizes = [2, 32], strides = [1, 1]} : vector<2x96xf32> to vector<2x32xf32>
    %323 = vector.extract_strided_slice %318 {offsets = [0, 64], sizes = [2, 32], strides = [1, 1]} : vector<2x96xf32> to vector<2x32xf32>
    %324 = arith.mulf %322, %286 : vector<2x32xf32>
    %325 = arith.mulf %321, %320 : vector<2x32xf32>
    %326 = arith.addf %324, %325 : vector<2x32xf32>
    %327 = math.tanh %326 : vector<2x32xf32>
    %328 = arith.mulf %323, %327 : vector<2x32xf32>
    %329 = tpu.concatenate %32, %328 in 1 : vector<2x32xf32>, vector<2x32xf32> -> vector<2x64xf32>
    %330 = tpu.concatenate %72, %288 in 1 : vector<2x32xf32>, vector<2x32xf32> -> vector<2x64xf32>
    %331 = tpu.concatenate %112, %248 in 1 : vector<2x32xf32>, vector<2x32xf32> -> vector<2x64xf32>
    %332 = tpu.concatenate %152, %208 in 1 : vector<2x32xf32>, vector<2x32xf32> -> vector<2x64xf32>
    %333 = tpu.concatenate %192, %168 in 1 : vector<2x32xf32>, vector<2x32xf32> -> vector<2x64xf32>
    %334 = tpu.concatenate %232, %128 in 1 : vector<2x32xf32>, vector<2x32xf32> -> vector<2x64xf32>
    %335 = tpu.concatenate %272, %88 in 1 : vector<2x32xf32>, vector<2x32xf32> -> vector<2x64xf32>
    %336 = tpu.concatenate %312, %48 in 1 : vector<2x32xf32>, vector<2x32xf32> -> vector<2x64xf32>
    %337 = tpu.concatenate %329, %330, %331, %332, %333, %334, %335, %336 in 0 : vector<2x64xf32>, vector<2x64xf32>, vector<2x64xf32>, vector<2x64xf32>, vector<2x64xf32>, vector<2x64xf32>, vector<2x64xf32>, vector<2x64xf32> -> vector<16x64xf32>
    %c0_34 = arith.constant 0 : index
    %c0_35 = arith.constant 0 : index
    %338 = vector.load %arg4[%c0_34, %c0_35] : memref<64x16xf32, #tpu.memory_space<vmem>>, vector<64x16xf32>
    %cst_36 = arith.constant dense<0.000000e+00> : vector<16x16xf32>
    %339 = tpu.matmul %337, %338, %cst_36 {dimension_numbers = #tpu.dot_dimension_numbers<[1], [0], [0], [1], [0, 0, 1, 1], [], []>} : vector<16x64xf32>, vector<64x16xf32>, vector<16x16xf32> -> vector<16x16xf32>
    %c0_37 = arith.constant 0 : index
    %c0_38 = arith.constant 0 : index
    %340 = vector.load %arg5[%c0_37, %c0_38] : memref<1x16xf32, #tpu.memory_space<vmem>>, vector<1x16xf32>
    %341 = vector.broadcast %340 : vector<1x16xf32> to vector<16x16xf32>
    %342 = arith.addf %339, %341 : vector<16x16xf32>
    %c0_39 = arith.constant 0 : index
    %c0_40 = arith.constant 0 : index
    %343 = vector.load %arg6[%c0_39, %c0_40] : memref<16x16xf32, #tpu.memory_space<vmem>>, vector<16x16xf32>
    tpu.vector_store %arg6[%c0_39, %c0_40], %342 {strides = array<i32>} : memref<16x16xf32, #tpu.memory_space<vmem>>, vector<16x16xf32>,
    return
  }
}

</mosaic_0001>

<bundles_post_ra>
// kernel: tpu_custom_call.1
= control target key start
LH: loop header
LB: loop body
LE: loop exit
PB: predicated region body
PF: predicated region fallthrough
CT: control target
= control target key end

     0   :  { %11 = vsyncpa [#allocation3], 0  ;;  %s2484_s0 = inlined_call_operand.hbm [shape: f32[16,16], index: 0, kind: input, shape index: {}]   ;;  %s2485_s1 = inlined_call_operand.hbm [shape: f32[16,256], index: 1, kind: input, shape index: {}]   ;;  %s2486_s2 = inlined_call_operand.hbm [shape: f32[64,256], index: 2, kind: input, shape index: {}]   ;;  %s2487_s3 = inlined_call_operand.hbm [shape: f32[1,256], index: 3, kind: input, shape index: {}]   ;;  %s2488_s4 = inlined_call_operand.hbm [shape: f32[64,16], index: 4, kind: input, shape index: {}]   ;;  %s2489_s5 = inlined_call_operand.hbm [shape: f32[1,16], index: 5, kind: input, shape index: {}]   ;;  %s2490_s6 = inlined_call_operand.hbm [shape: f32[16,16], index: 6, kind: output, shape index: {}]  }
   0x1   :  { %12 = vsyncpa [#allocation6], 0 }
   0x2   :  { %13 = vsyncpa [#allocation9], 0 }
   0x3   :  { %14 = vsyncpa [#allocation12], 0 }
   0x4   :  { %15 = vsyncpa [#allocation4], 0  ;;  %s2043_s21 = smov [#allocation5]   ;;  %s1879_s25 = scalar_lea.hbm %s2485_s1, 512 }
   0x5   :  { %s33_s22 = sshll.u32 %s2043_s21, 4  ;;  %p1880_p0 = scmp.ne.s32.totalorder %s2485_s1, %s1879_s25  ;;  %s34_s22 = int_to_ptr.vmem [resolvable:$true] %s33_s22 }
   0x6   :  { %p1883_p1 = scmp.lt.u32.totalorder %s1879_s25, %s2485_s1 }
   0x8   :  { %p1885_p2 = pnand %p1883_p1, %p1880_p0 }
   0xa   :  { %1888 = shalt.err (!%p1885_p2)
}
   0xb   :  { %s1889_s30 = scalar_lea.vmem %s34_s22, 512  ;;  %p1894_p4 = scmp.lt.s32.totalorder %s34_s22, %s34_s22 }
   0xc   :  { %p1890_p3 = scmp.ne.s32.totalorder %s34_s22, %s1889_s30  ;;  %p1895_p5 = scmp.lt.s32.totalorder %s1889_s30, %s1889_s30 }
   0xe   :  { %p1896_p6 = por %p1895_p5, %p1894_p4 }
  0x10   :  { %p1897_p7 = pnand %p1896_p6, %p1890_p3 }
  0x12   :  { %1900 = shalt.err (!%p1897_p7)
}
  0x13   :  { %s2044_s7 = smov 256   ;;  %s2045_s8 = smov 16  }
  0x14   :  { %39 = dma.hbm_to_vmem [thread:$0]  %s2485_s1, 512, %s34_s22, [#allocation6], %s2044_s7, %s2044_s7, %s2045_s8  }
  0x15   :  { %s2046_s11 = smov [#allocation8]   ;;  %s2047_s13 = smov [#allocation2]  }
  0x16   :  { %s58_s12 = sshll.u32 %s2046_s11, 4  ;;  %s21_s14 = sshll.u32 %s2047_s13, 4  ;;  %s59_s12 = int_to_ptr.vmem [resolvable:$true] %s58_s12  ;;  %s22_s14 = int_to_ptr.vmem [resolvable:$true] %s21_s14 }
  0x17   :  { %s1901_s17 = scalar_lea.hbm %s2487_s3, 32 }
  0x18   :  { %p1902_p8 = scmp.ne.s32.totalorder %s2487_s3, %s1901_s17  ;;  %p1905_p9 = scmp.lt.u32.totalorder %s1901_s17, %s2487_s3 }
  0x1a   :  { %p1907_p10 = pnand %p1905_p9, %p1902_p8 }
  0x1c   :  { %1910 = shalt.err (!%p1907_p10)
}
  0x1d   :  { %s1911_s1 = scalar_lea.vmem %s59_s12, 32  ;;  %p1916_p12 = scmp.lt.s32.totalorder %s59_s12, %s59_s12 }
  0x1e   :  { %p1912_p11 = scmp.ne.s32.totalorder %s59_s12, %s1911_s1  ;;  %p1917_p13 = scmp.lt.s32.totalorder %s1911_s1, %s1911_s1 }
  0x20   :  { %p1918_p0 = por %p1917_p13, %p1916_p12 }
  0x22   :  { %p1919_p1 = pnand %p1918_p0, %p1912_p11 }
  0x24   :  { %1922 = shalt.err (!%p1919_p1)
}
  0x25   :  { %61 = dma.hbm_to_vmem [thread:$0]  %s2487_s3, 32, %s59_s12, [#allocation9]  }
  0x26   :  { %s1923_s26 = scalar_lea.hbm %s2484_s0, 256 }
  0x27   :  { %p1924_p2 = scmp.ne.s32.totalorder %s2484_s0, %s1923_s26  ;;  %p1927_p3 = scmp.lt.u32.totalorder %s1923_s26, %s2484_s0 }
  0x29   :  { %p1929_p4 = pnand %p1927_p3, %p1924_p2 }
  0x2b   :  { %1932 = shalt.err (!%p1929_p4)
}
  0x2c   :  { %s1933_s9 = scalar_lea.vmem %s22_s14, 256  ;;  %p1938_p6 = scmp.lt.s32.totalorder %s22_s14, %s22_s14 }
  0x2d   :  { %p1934_p5 = scmp.ne.s32.totalorder %s22_s14, %s1933_s9  ;;  %p1939_p7 = scmp.lt.s32.totalorder %s1933_s9, %s1933_s9 }
  0x2f   :  { %p1940_p8 = por %p1939_p7, %p1938_p6 }
  0x31   :  { %p1941_p9 = pnand %p1940_p8, %p1934_p5 }
  0x33   :  { %1944 = shalt.err (!%p1941_p9)
}
  0x34   :  { %s2048_s3 = smov 128   ;;  %s2049_s10 = smov 8  }
  0x35   :  { %27 = dma.hbm_to_vmem [thread:$0]  %s2484_s0, 256, %s22_s14, [#allocation3], %s2048_s3, %s2048_s3, %s2049_s10  }
  0x36   :  { %s2050_s13 = smov [#allocation7]   ;;  %s2051_s16 = smov [#allocation10]  }
  0x37   :  { %s45_s15 = sshll.u32 %s2050_s13, 4  ;;  %s67_s17 = sshll.u32 %s2051_s16, 4  ;;  %s46_s15 = int_to_ptr.vmem [resolvable:$true] %s45_s15  ;;  %s68_s17 = int_to_ptr.vmem [resolvable:$true] %s67_s17 }
  0x38   :  { %s1945_s20 = scalar_lea.hbm %s2486_s2, 2048 }
  0x39   :  { %p1946_p10 = scmp.ne.s32.totalorder %s2486_s2, %s1945_s20  ;;  %p1949_p11 = scmp.lt.u32.totalorder %s1945_s20, %s2486_s2 }
  0x3b   :  { %p1951_p12 = pnand %p1949_p11, %p1946_p10 }
  0x3d   :  { %1954 = shalt.err (!%p1951_p12)
}
  0x3e   :  { %s1955_s0 = scalar_lea.vmem %s46_s15, 2048  ;;  %p1960_p0 = scmp.lt.s32.totalorder %s46_s15, %s46_s15 }
  0x3f   :  { %p1956_p13 = scmp.ne.s32.totalorder %s46_s15, %s1955_s0  ;;  %p1961_p1 = scmp.lt.s32.totalorder %s1955_s0, %s1955_s0 }
  0x41   :  { %p1962_p2 = por %p1961_p1, %p1960_p0 }
  0x43   :  { %p1963_p3 = pnand %p1962_p2, %p1956_p13 }
  0x45   :  { %1966 = shalt.err (!%p1963_p3)
}
  0x46   :  { %51 = dma.hbm_to_vmem [thread:$0]  %s2486_s2, 2048, %s46_s15, [#allocation6], %s2044_s7, %s2044_s7, %s2045_s8  }
  0x47   :  { %s1967_s27 = scalar_lea.hbm %s2488_s4, 1024 }
  0x48   :  { %p1968_p4 = scmp.ne.s32.totalorder %s2488_s4, %s1967_s27  ;;  %p1971_p5 = scmp.lt.u32.totalorder %s1967_s27, %s2488_s4 }
  0x4a   :  { %p1973_p6 = pnand %p1971_p5, %p1968_p4 }
  0x4c   :  { %1976 = shalt.err (!%p1973_p6)
}
  0x4d   :  { %s1977_s11 = scalar_lea.vmem %s68_s17, 1024  ;;  %p1982_p8 = scmp.lt.s32.totalorder %s68_s17, %s68_s17 }
  0x4e   :  { %p1978_p7 = scmp.ne.s32.totalorder %s68_s17, %s1977_s11  ;;  %p1983_p9 = scmp.lt.s32.totalorder %s1977_s11, %s1977_s11 }
  0x50   :  { %p1984_p10 = por %p1983_p9, %p1982_p8 }
  0x52   :  { %p1985_p11 = pnand %p1984_p10, %p1978_p7 }
  0x54   :  { %1988 = shalt.err (!%p1985_p11)
}
  0x55   :  { %73 = dma.hbm_to_vmem [thread:$0]  %s2488_s4, 1024, %s68_s17, [#allocation9], %s2048_s3, %s2048_s3, %s2049_s10  }
  0x56   :  { %s2052_s8 = smov [#allocation11]   ;;  %s1989_s16 = scalar_lea.hbm %s2489_s5, 16 }
  0x57   :  { %s80_s12 = sshll.u32 %s2052_s8, 4  ;;  %p1990_p12 = scmp.ne.s32.totalorder %s2489_s5, %s1989_s16  ;;  %s81_s12 = int_to_ptr.vmem [resolvable:$true] %s80_s12 }
  0x58   :  { %p1993_p13 = scmp.lt.u32.totalorder %s1989_s16, %s2489_s5 }
  0x5a   :  { %p1995_p0 = pnand %p1993_p13, %p1990_p12 }
  0x5c   :  { %1998 = shalt.err (!%p1995_p0)
}
  0x5d   :  { %s1999_s1 = scalar_lea.vmem %s81_s12, 16  ;;  %s2003_s4 = scalar_lea.vmem %s81_s12, 32 }
  0x5e   :  { %p2000_p1 = scmp.ne.s32.totalorder %s81_s12, %s1999_s1  ;;  %p2004_p2 = scmp.lt.s32.totalorder %s81_s12, %s81_s12 }
  0x5f   :  { %p2005_p3 = scmp.lt.s32.totalorder %s2003_s4, %s1999_s1 }
  0x61   :  { %p2006_p4 = por %p2005_p3, %p2004_p2 }
  0x63   :  { %p2007_p5 = pnand %p2006_p4, %p2000_p1 }
  0x65   :  { %2010 = shalt.err (!%p2007_p5)
}
  0x66   :  { %83 = dma.hbm_to_vmem [thread:$0]  %s2489_s5, 16, %s81_s12, [#allocation12]  }
  0x67   :  { %2033 = dma.done.wait [#allocation3], 256  }
  0x68   :  { %2034 = vsyncadd [#allocation3], 4294967040 }
  0x69   :  { %2035 = dma.done.wait [#allocation6], 2560  }
  0x6a   :  { %2036 = vsyncadd [#allocation6], 4294964736 }
  0x6b   :  { %2037 = dma.done.wait [#allocation9], 1056  }
  0x6c   :  { %2038 = vsyncadd [#allocation9], 4294966240 }
  0x6d   :  { %2039 = dma.done.wait [#allocation12], 16  }
  0x6e   :  { %2040 = vsyncadd [#allocation12], 4294967280  ;;  %v2053_v0 = vmov 0.0   ;;  %v205_v1 = vld [vmem:[#allocation7 + $0x8] sm:$0xff]  ;;  %v207_v2 = vld [vmem:[#allocation7 + $0x18] sm:$0xff]  ;;  %vm120_vm0 = vcmask 130048   ;;  %v110_v33 = vlaneseq }
  0x6f   :  { %191 = vmatprep.mubr.f32.mxu0 %v2053_v0  ;;  %288 = vmatprep.mubr.f32.mxu1 %v2053_v0  ;;  %v204_v3 = vld [vmem:[#allocation7] sm:$0xff]  ;;  %v2179_v4 = vpack.c.bf16 %v207_v2, %v205_v1  ;;  %v206_v5 = vld [vmem:[#allocation7 + $0x10] sm:$0xff]  ;;  %v209_v6 = vld [vmem:[#allocation7 + $0x28] sm:$0xff]  ;;  %s2054_s5 = smov 32   ;;  %s2055_s23 = smov 96   ;;  %vm357_vm1 = vcmask 261120  }
  0x70   :  { %v211_v7 = vld [vmem:[#allocation7 + $0x38] sm:$0xff]  ;;  %v2181_v8 = vpack.c.bf16 %v206_v5, %v204_v3  ;;  %v208_v10 = vld [vmem:[#allocation7 + $0x20] sm:$0xff]  ;;  %v210_v11 = vld [vmem:[#allocation7 + $0x30] sm:$0xff]  ;;  %v111_v34 = vshrl.u32 %v110_v33, 7  ;;  %s2056_s0 = smov 64   ;;  %vm220_vm2 = vcmask 523264  }
  0x71   :  { %v2183_v9 = vpack.c.bf16 %v211_v7, %v209_v6  ;;  %v105_v12 = vld [vmem:[#allocation5 + $0x8] sm:$0xff]  ;;  %1593 = vmatprep.subr.bf16.mxu1 %v2179_v4  ;;  %v107_v13 = vld [vmem:[#allocation5 + $0x18] sm:$0xff]  ;;  %v104_v14 = vld [vmem:[#allocation5] sm:$0xff]  ;;  %v2187_v16 = vpack.c.bf16 %v210_v11, %v208_v10  ;;  %vm1404_vm3 = vcmask 1041408   ;;  %vm1408_vm4 = vcmask 1045504   ;;  %s2057_s14 = smov [#allocation13]  }
  0x72   :  { %v106_v15 = vld [vmem:[#allocation5 + $0x10] sm:$0xff]  ;;  %1595 = vmatpush1.bf16.msra.mxu1 %v2181_v8  ;;  %v1588_v17 = vpack.c.bf16 %v107_v13, %v105_v12  ;;  %v213_v19 = vld [vmem:[#allocation7 + $0x48] sm:$0xff]  ;;  %v215_v20 = vld [vmem:[#allocation7 + $0x58] sm:$0xff]  ;;  %v116_v35 = vsub.s32 1, %v111_v34  ;;  %v112_v38 = vsub.s32 0, %v111_v34  ;;  %vm1406_vm5 = vcmask 1043456  }
  0x73   :  { %v1590_v18 = vpack.c.bf16 %v106_v15, %v104_v14  ;;  %1597 = vmatprep.subr.bf16.mxu1 %v2183_v9  ;;  %v2190_v21 = vpack.c.bf16 %v215_v20, %v213_v19  ;;  %v212_v22 = vld [vmem:[#allocation7 + $0x40] sm:$0xff]  ;;  %v214_v23 = vld [vmem:[#allocation7 + $0x50] sm:$0xff]  ;;  %v217_v24 = vld [vmem:[#allocation7 + $0x68] sm:$0xff]  ;;  %s1516_s24 = sshll.u32 %s2057_s14, 4  ;;  %s1517_s24 = int_to_ptr.vmem [resolvable:$true] %s1516_s24 }
  0x74   :  { %1589 = vmatprep.subr.bf16.mxu0 %v1588_v17  ;;  %v219_v25 = vld [vmem:[#allocation7 + $0x78] sm:$0xff]  ;;  %v102_v26 = vld [vmem:[#allocation2] sm:$0xff]  ;;  %v2193_v27 = vpack.c.bf16 %v214_v23, %v212_v22  ;;  %v216_v29 = vld [vmem:[#allocation7 + $0x60] sm:$0xff]  ;;  %s2011_s25 = scalar_lea.vmem %s1517_s24, 256  ;;  %p2016_p7 = scmp.lt.s32.totalorder %s1517_s24, %s1517_s24 }
  0x75   :  { %1591 = vmatpush1.bf16.msra.mxu0 %v1590_v18  ;;  %v2197_v28 = vpack.c.bf16 %v219_v25, %v217_v24  ;;  %v218_v30 = vld [vmem:[#allocation7 + $0x70] sm:$0xff]  ;;  %v103_v31 = vld [vmem:[#allocation2 + $0x8] sm:$0xff]  ;;  %v108_v36 = vld [vmem:[#allocation8] sm:$0x3]  ;;  %p2012_p6 = scmp.ne.s32.totalorder %s1517_s24, %s2011_s25  ;;  %p2017_p8 = scmp.lt.s32.totalorder %s2011_s25, %s2011_s25 }
  0x76   :  { %1599 = vmatpush1.bf16.msra.mxu1 %v2187_v16  ;;  %1609 = vmatprep.subr.bf16.mxu0 %v2179_v4  ;;  %v2203_v32 = vpack.c.bf16 %v218_v30, %v216_v29  ;;  %v117_v37 = vrot.slane %v108_v36, %v116_v35  ;;  %v113_v42 = vrot.slane %v108_v36, %v112_v38 }
  0x77   :  { %1601 = vmatprep.subr.bf16.mxu1 %v2190_v21  ;;  %p2018_p9 = por %p2017_p8, %p2016_p7 }
  0x78   :  { %1531 = vmatmul.mubr.msk.f32.vlgmr.msra.gmra.mrb[0].mxu0 %vm120_vm0, %v102_v26 }
  0x79   :  { %197 = vmatprep.mubr.f32.mxu0 %v2053_v0  ;;  %1611 = vmatpush1.bf16.msra.mxu0 %v2181_v8  ;;  %p2019_p10 = pnand %p2018_p9, %p2012_p6 }
  0x7a   :  { %1603 = vmatpush1.bf16.msra.mxu1 %v2193_v27  ;;  %1613 = vmatprep.subr.bf16.mxu0 %v2183_v9 }
  0x7b   :  { %1605 = vmatprep.subr.bf16.mxu1 %v2197_v28 }
  0x7c   :  { %1532 = vmatmul.mubr.msk.f32.gmra.mrb[2].mxu0 %vm120_vm0, %v103_v31 }
  0x7d   :  { %1615 = vmatpush1.bf16.msra.mxu0 %v2187_v16  ;;  %426 = vmatprep.mubr.f32.mxu0 %v2053_v0 }
  0x7e   :  { %1607 = vmatpush1.bf16.msra.mxu1 %v2203_v32  ;;  %1617 = vmatprep.subr.bf16.mxu0 %v2190_v21 }
  0x7f   :  { %1625 = vmatprep.subr.bf16.mxu1 %v2179_v4 }
  0x81   :  { %289 = vmatmul.mubr.f32.vlgmr.msra.gmra.mrb[0].mxu1 %v2053_v0  ;;  %1619 = vmatpush1.bf16.msra.mxu0 %v2193_v27 }
  0x82   :  { %1621 = vmatprep.subr.bf16.mxu0 %v2197_v28  ;;  %1627 = vmatpush1.bf16.msra.mxu1 %v2181_v8 }
  0x83   :  { %1629 = vmatprep.subr.bf16.mxu1 %v2183_v9  ;;  %573 = vmatprep.mubr.f32.mxu1 %v2053_v0 }
  0x85   :  { %1623 = vmatpush1.bf16.msra.mxu0 %v2203_v32 }
  0x86   :  { %1631 = vmatpush1.bf16.msra.mxu1 %v2187_v16  ;;  %1641 = vmatprep.subr.bf16.mxu0 %v2179_v4 }
  0x87   :  { %1633 = vmatprep.subr.bf16.mxu1 %v2190_v21 }
  0x8a   :  { %1635 = vmatpush1.bf16.msra.mxu1 %v2193_v27 }
  0x8b   :  { %1637 = vmatprep.subr.bf16.mxu1 %v2197_v28 }
  0x8e   :  { %1639 = vmatpush1.bf16.msra.mxu1 %v2203_v32 }
  0x8f   :  { %1657 = vmatprep.subr.bf16.mxu1 %v2179_v4 }
 0x14b   :  { %v193_v39 = vpop.f32.mrb[0].mxu0 }
 0x14c   :  { %v195_v40 = vpop.f32.mrb[1].mxu0  ;;  %v2233_v50 = vadd.f32 %v193_v39, %v113_v42 }
 0x14d   :  { %v2227_v41 = vadd.f32 %v195_v40, %v117_v37 }
 0x14f   :  { %v199_v43 = vpop.f32.mrb[2].mxu0 }
 0x150   :  { %v2229_v44 = vadd.f32 %v199_v43, %v113_v42  ;;  %v201_v45 = vpop.f32.mrb[3].mxu0 }
 0x151   :  { %v2231_v46 = vadd.f32 %v201_v45, %v117_v37 }
 0x154   :  { %v290_v47 = vpop.f32.mrb[0].mxu1 }
 0x155   :  { %v292_v48 = vpop.f32.mrb[1].mxu1  ;;  %v295_v52 = vadd.f32 %v290_v47, %v2233_v50 }
 0x156   :  { %v297_v49 = vrot.slane %v292_v48, 2 }
 0x157   :  { %v1533_v56 = vmul.f32 -1.442695, %v295_v52 }
 0x158   :  { %v299_v51 = vadd.f32 %v297_v49, %v2231_v46 }
 0x15a   :  { %1751 = vtanh.f32 %v299_v51  ;;  %v1534_v55 = vmul.f32 -1.442695, %v299_v51 }
 0x15b   :  { %1753 = vtanh.f32 %v295_v52 }
 0x15c   :  { %1755 = vpow2.f32 %v1534_v55 }
 0x15d   :  { %1757 = vpow2.f32 %v1533_v56 }
 0x164   :  { %v1752_v53 = vpop.eup %1751 }
 0x165   :  { %333 = vrot.lane.b32.xlu0 %v1752_v53, %s2054_s5  ;;  %v1754_v54 = vpop.eup %1753 }
 0x166   :  { %v1756_v57 = vpop.eup %1755 }
 0x167   :  { %v327_v58 = vadd.f32 1.0, %v1756_v57  ;;  %v1758_v59 = vpop.eup %1757 }
 0x168   :  { %v303_v60 = vadd.f32 1.0, %v1758_v59 }
 0x169   :  { %309 = vrot.lane.b32.xlu0 %v1754_v54, %s2054_s5  ;;  %1759 = vrcp.f32 %v327_v58 }
 0x16a   :  { %1761 = vrcp.f32 %v303_v60 }
 0x173   :  { %v1760_v61 = vpop.eup %1759 }
 0x174   :  { %v1762_v1 = vpop.eup %1761  ;;  %v331_v5 = vmul.f32 0.0, %v1760_v61 }
 0x175   :  { %v307_v10 = vmul.f32 0.0, %v1762_v1 }
 0x1d7   :  { %v334_v62 = vpop.permute.xlu0 %333 }
 0x1d8   :  { %v336_v63 = vmul.f32 %v1760_v61, %v334_v62 }
 0x1da   :  { %338 = vrot.lane.b32.xlu1 %v336_v63, %s2054_s5 }
 0x1db   :  { %v310_v2 = vpop.permute.xlu0 %309 }
 0x1dc   :  { %v312_v3 = vmul.f32 %v1762_v1, %v310_v2 }
 0x1de   :  { %314 = vrot.lane.b32.xlu1 %v312_v3, %s2054_s5 }
 0x24c   :  { %v339_v6 = vpop.permute.xlu1 %338 }
 0x24d   :  { %v2241_v7 = vadd.f32 %v339_v6, %v331_v5 }
 0x24f   :  { %1763 = vtanh.f32 %v2241_v7  ;;  %v476_v53 = vrot.slane %v2241_v7, 2 }
 0x250   :  { %v315_v11 = vpop.permute.xlu1 %314 }
 0x251   :  { %v2244_v12 = vadd.f32 %v315_v11, %v307_v10 }
 0x253   :  { %1765 = vtanh.f32 %v2244_v12  ;;  %v449_v52 = vrot.slane %v2244_v12, 6 }
 0x259   :  { %v1764_v13 = vpop.eup %1763 }
 0x25a   :  { %344 = vrot.lane.b32.xlu0 %v1764_v13, %s2054_s5 }
 0x25d   :  { %v1766_v14 = vpop.eup %1765 }
 0x25e   :  { %320 = vrot.lane.b32.xlu1 %v1766_v14, %s2054_s5 }
 0x2cc   :  { %v345_v15 = vpop.permute.xlu0 %344 }
 0x2cd   :  { %v2249_v17 = vmul.f32 %v1760_v61, %v345_v15 }
 0x2cf   :  { %v353_v18 = vrot.slane %v2249_v17, 6 }
 0x2d0   :  { %v321_v19 = vpop.permute.xlu1 %320 }
 0x2d1   :  { %v323_v20 = vmul.f32 %v1762_v1, %v321_v19  ;;  %354 = vrot.lane.b32.xlu1 %v353_v18, %s2055_s23 }
 0x2d3   :  { %349 = vrot.lane.b32.xlu0 %v323_v20, %s2056_s0 }
 0x343   :  { %v355_v22 = vpop.permute.xlu1 %354 }
 0x345   :  { %v2254_v23 = vpop.permute.xlu0 %349 }
 0x346   :  { %v358_v24 = vsel %vm357_vm1, %v2254_v23, %v355_v22 }
 0x347   :  { %1535 = vmatmul.mubr.msk.f32.vlgmr.msra.gmra.mrb[4].mxu0 %vm220_vm2, %v358_v24 }
 0x348   :  { %1643 = vmatpush1.bf16.msra.mxu0 %v2181_v8  ;;  %720 = vmatprep.mubr.f32.mxu0 %v2053_v0 }
 0x349   :  { %1645 = vmatprep.subr.bf16.mxu0 %v2183_v9 }
 0x34c   :  { %1647 = vmatpush1.bf16.msra.mxu0 %v2187_v16 }
 0x34d   :  { %1649 = vmatprep.subr.bf16.mxu0 %v2190_v21 }
 0x350   :  { %1651 = vmatpush1.bf16.msra.mxu0 %v2193_v27 }
 0x351   :  { %1653 = vmatprep.subr.bf16.mxu0 %v2197_v28 }
 0x354   :  { %1655 = vmatpush1.bf16.msra.mxu0 %v2203_v32 }
 0x355   :  { %1673 = vmatprep.subr.bf16.mxu0 %v2179_v4 }
 0x41a   :  { %v428_v25 = vpop.f32.mrb[4].mxu0 }
 0x41b   :  { %v434_v26 = vrot.slane %v428_v25, 6  ;;  %v430_v29 = vpop.f32.mrb[5].mxu0 }
 0x41c   :  { %v438_v30 = vrot.slane %v430_v29, 4 }
 0x41d   :  { %v436_v31 = vadd.f32 %v434_v26, %v2233_v50 }
 0x41e   :  { %v440_v33 = vadd.f32 %v438_v30, %v2231_v46 }
 0x41f   :  { %1767 = vtanh.f32 %v436_v31  ;;  %v1536_v36 = vmul.f32 -1.442695, %v436_v31 }
 0x420   :  { %1769 = vtanh.f32 %v440_v33  ;;  %v1537_v37 = vmul.f32 -1.442695, %v440_v33 }
 0x421   :  { %1771 = vpow2.f32 %v1536_v36 }
 0x422   :  { %1773 = vpow2.f32 %v1537_v37 }
 0x429   :  { %v1768_v34 = vpop.eup %1767 }
 0x42a   :  { %v1770_v35 = vpop.eup %1769  ;;  %453 = vrot.lane.b32.xlu1 %v1768_v34, %s2054_s5 }
 0x42b   :  { %480 = vrot.lane.b32.xlu0 %v1770_v35, %s2054_s5  ;;  %v1772_v38 = vpop.eup %1771 }
 0x42c   :  { %v1774_v39 = vpop.eup %1773  ;;  %v444_v40 = vadd.f32 1.0, %v1772_v38 }
 0x42d   :  { %v471_v42 = vadd.f32 1.0, %v1774_v39 }
 0x42e   :  { %1775 = vrcp.f32 %v444_v40 }
 0x42f   :  { %1777 = vrcp.f32 %v471_v42 }
 0x438   :  { %v1776_v43 = vpop.eup %1775 }
 0x439   :  { %v1778_v47 = vpop.eup %1777  ;;  %v451_v54 = vmul.f32 %v1776_v43, %v449_v52 }
 0x43a   :  { %v478_v56 = vmul.f32 %v1778_v47, %v476_v53 }
 0x49c   :  { %v454_v45 = vpop.permute.xlu1 %453 }
 0x49d   :  { %v456_v48 = vmul.f32 %v1776_v43, %v454_v45  ;;  %v481_v49 = vpop.permute.xlu0 %480 }
 0x49e   :  { %v483_v51 = vmul.f32 %v1778_v47, %v481_v49 }
 0x49f   :  { %458 = vrot.lane.b32.xlu1 %v456_v48, %s2054_s5 }
 0x4a0   :  { %485 = vrot.lane.b32.xlu0 %v483_v51, %s2054_s5 }
 0x511   :  { %v459_v55 = vpop.permute.xlu1 %458 }
 0x512   :  { %v2276_v57 = vadd.f32 %v459_v55, %v451_v54  ;;  %v486_v58 = vpop.permute.xlu0 %485 }
 0x513   :  { %v2278_v59 = vadd.f32 %v486_v58, %v478_v56 }
 0x514   :  { %1779 = vtanh.f32 %v2276_v57  ;;  %v596_v38 = vrot.slane %v2276_v57, 6 }
 0x515   :  { %1781 = vtanh.f32 %v2278_v59  ;;  %v623_v39 = vrot.slane %v2278_v59, 2 }
 0x51e   :  { %v1780_v60 = vpop.eup %1779 }
 0x51f   :  { %v1782_v61 = vpop.eup %1781  ;;  %464 = vrot.lane.b32.xlu1 %v1780_v60, %s2054_s5 }
 0x520   :  { %491 = vrot.lane.b32.xlu0 %v1782_v61, %s2054_s5 }
 0x591   :  { %v465_v62 = vpop.permute.xlu1 %464 }
 0x592   :  { %v467_v63 = vmul.f32 %v1776_v43, %v465_v62  ;;  %v492_v1 = vpop.permute.xlu0 %491 }
 0x593   :  { %v2284_v2 = vmul.f32 %v1778_v47, %v492_v1 }
 0x594   :  { %496 = vrot.lane.b32.xlu0 %v467_v63, %s2056_s0 }
 0x595   :  { %v500_v3 = vrot.slane %v2284_v2, 2 }
 0x597   :  { %501 = vrot.lane.b32.xlu1 %v500_v3, %s2055_s23 }
 0x606   :  { %v2289_v5 = vpop.permute.xlu0 %496 }
 0x609   :  { %v502_v6 = vpop.permute.xlu1 %501 }
 0x60a   :  { %v504_v7 = vsel %vm357_vm1, %v2289_v5, %v502_v6 }
 0x60b   :  { %v506_v10 = vrot.slane %v504_v7, 2 }
 0x60d   :  { %1538 = vmatmul.mubr.msk.f32.vlgmr.msra.gmra.mrb[2].mxu1 %vm220_vm2, %v506_v10 }
 0x60e   :  { %1659 = vmatpush1.bf16.msra.mxu1 %v2181_v8  ;;  %864 = vmatprep.mubr.f32.mxu1 %v2053_v0 }
 0x60f   :  { %1661 = vmatprep.subr.bf16.mxu1 %v2183_v9 }
 0x612   :  { %1663 = vmatpush1.bf16.msra.mxu1 %v2187_v16 }
 0x613   :  { %1665 = vmatprep.subr.bf16.mxu1 %v2190_v21 }
 0x616   :  { %1667 = vmatpush1.bf16.msra.mxu1 %v2193_v27 }
 0x617   :  { %1669 = vmatprep.subr.bf16.mxu1 %v2197_v28 }
 0x61a   :  { %1671 = vmatpush1.bf16.msra.mxu1 %v2203_v32 }
 0x61b   :  { %1689 = vmatprep.subr.bf16.mxu1 %v2179_v4 }
 0x6e0   :  { %v575_v11 = vpop.f32.mrb[2].mxu1 }
 0x6e1   :  { %v581_v12 = vrot.slane %v575_v11, 4  ;;  %v577_v13 = vpop.f32.mrb[3].mxu1 }
 0x6e2   :  { %v585_v14 = vrot.slane %v577_v13, 6 }
 0x6e3   :  { %v583_v15 = vadd.f32 %v581_v12, %v2233_v50 }
 0x6e4   :  { %v587_v18 = vadd.f32 %v585_v14, %v2231_v46 }
 0x6e5   :  { %1783 = vtanh.f32 %v583_v15  ;;  %v1539_v22 = vmul.f32 -1.442695, %v583_v15 }
 0x6e6   :  { %1785 = vtanh.f32 %v587_v18  ;;  %v1540_v24 = vmul.f32 -1.442695, %v587_v18 }
 0x6e7   :  { %1787 = vpow2.f32 %v1539_v22 }
 0x6e8   :  { %1789 = vpow2.f32 %v1540_v24 }
 0x6ef   :  { %v1784_v19 = vpop.eup %1783 }
 0x6f0   :  { %v1786_v20 = vpop.eup %1785  ;;  %600 = vrot.lane.b32.xlu1 %v1784_v19, %s2054_s5 }
 0x6f1   :  { %627 = vrot.lane.b32.xlu0 %v1786_v20, %s2054_s5  ;;  %v1788_v25 = vpop.eup %1787 }
 0x6f2   :  { %v1790_v26 = vpop.eup %1789  ;;  %v591_v29 = vadd.f32 1.0, %v1788_v25 }
 0x6f3   :  { %v618_v30 = vadd.f32 1.0, %v1790_v26 }
 0x6f4   :  { %1791 = vrcp.f32 %v591_v29 }
 0x6f5   :  { %1793 = vrcp.f32 %v618_v30 }
 0x6fe   :  { %v1792_v31 = vpop.eup %1791 }
 0x6ff   :  { %v1794_v34 = vpop.eup %1793  ;;  %v598_v40 = vmul.f32 %v1792_v31, %v596_v38 }
 0x700   :  { %v625_v43 = vmul.f32 %v1794_v34, %v623_v39 }
 0x762   :  { %v601_v33 = vpop.permute.xlu1 %600 }
 0x763   :  { %v603_v35 = vmul.f32 %v1792_v31, %v601_v33  ;;  %v628_v36 = vpop.permute.xlu0 %627 }
 0x764   :  { %v630_v37 = vmul.f32 %v1794_v34, %v628_v36 }
 0x765   :  { %605 = vrot.lane.b32.xlu1 %v603_v35, %s2054_s5 }
 0x766   :  { %632 = vrot.lane.b32.xlu0 %v630_v37, %s2054_s5 }
 0x7d7   :  { %v606_v42 = vpop.permute.xlu1 %605 }
 0x7d8   :  { %v2311_v45 = vadd.f32 %v606_v42, %v598_v40  ;;  %v633_v47 = vpop.permute.xlu0 %632 }
 0x7d9   :  { %v635_v48 = vadd.f32 %v633_v47, %v625_v43 }
 0x7da   :  { %1795 = vtanh.f32 %v2311_v45  ;;  %v740_v24 = vrot.slane %v2311_v45, 6 }
 0x7db   :  { %1797 = vtanh.f32 %v635_v48  ;;  %v767_v22 = vrot.slane %v635_v48, 2 }
 0x7e4   :  { %v1796_v49 = vpop.eup %1795 }
 0x7e5   :  { %v1798_v51 = vpop.eup %1797  ;;  %611 = vrot.lane.b32.xlu1 %v1796_v49, %s2054_s5 }
 0x7e6   :  { %638 = vrot.lane.b32.xlu0 %v1798_v51, %s2054_s5 }
 0x857   :  { %v612_v52 = vpop.permute.xlu1 %611 }
 0x858   :  { %v614_v53 = vmul.f32 %v1792_v31, %v612_v52  ;;  %v639_v54 = vpop.permute.xlu0 %638 }
 0x859   :  { %v2316_v55 = vmul.f32 %v1794_v34, %v639_v54 }
 0x85a   :  { %643 = vrot.lane.b32.xlu0 %v614_v53, %s2056_s0 }
 0x85b   :  { %v647_v56 = vrot.slane %v2316_v55, 6 }
 0x85d   :  { %648 = vrot.lane.b32.xlu1 %v647_v56, %s2055_s23 }
 0x8cc   :  { %v2321_v57 = vpop.permute.xlu0 %643 }
 0x8cf   :  { %v649_v58 = vpop.permute.xlu1 %648 }
 0x8d0   :  { %v651_v59 = vsel %vm357_vm1, %v2321_v57, %v649_v58 }
 0x8d1   :  { %v653_v60 = vrot.slane %v651_v59, 4 }
 0x8d3   :  { %1541 = vmatmul.mubr.msk.f32.vlgmr.msra.gmra.mrb[6].mxu0 %vm220_vm2, %v653_v60 }
 0x8d4   :  { %1675 = vmatpush1.bf16.msra.mxu0 %v2181_v8  ;;  %1007 = vmatprep.mubr.f32.mxu0 %v2053_v0 }
 0x8d5   :  { %1677 = vmatprep.subr.bf16.mxu0 %v2183_v9 }
 0x8d8   :  { %1679 = vmatpush1.bf16.msra.mxu0 %v2187_v16 }
 0x8d9   :  { %1681 = vmatprep.subr.bf16.mxu0 %v2190_v21 }
 0x8dc   :  { %1683 = vmatpush1.bf16.msra.mxu0 %v2193_v27 }
 0x8dd   :  { %1685 = vmatprep.subr.bf16.mxu0 %v2197_v28 }
 0x8e0   :  { %1687 = vmatpush1.bf16.msra.mxu0 %v2203_v32 }
 0x8e1   :  { %1705 = vmatprep.subr.bf16.mxu0 %v2179_v4 }
 0x9a6   :  { %v722_v61 = vpop.f32.mrb[6].mxu0 }
 0x9a7   :  { %v728_v62 = vrot.slane %v722_v61, 2  ;;  %v724_v63 = vpop.f32.mrb[7].mxu0 }
 0x9a8   :  { %v731_v1 = vadd.f32 %v724_v63, %v2231_v46 }
 0x9a9   :  { %v730_v3 = vadd.f32 %v728_v62, %v2233_v50 }
 0x9aa   :  { %1799 = vtanh.f32 %v731_v1  ;;  %v1543_v10 = vmul.f32 -1.442695, %v731_v1 }
 0x9ab   :  { %1801 = vtanh.f32 %v730_v3  ;;  %v1542_v11 = vmul.f32 -1.442695, %v730_v3 }
 0x9ac   :  { %1803 = vpow2.f32 %v1543_v10 }
 0x9ad   :  { %1805 = vpow2.f32 %v1542_v11 }
 0x9b4   :  { %v1800_v6 = vpop.eup %1799 }
 0x9b5   :  { %v1802_v7 = vpop.eup %1801  ;;  %771 = vrot.lane.b32.xlu0 %v1800_v6, %s2054_s5 }
 0x9b6   :  { %744 = vrot.lane.b32.xlu1 %v1802_v7, %s2054_s5  ;;  %v1804_v4 = vpop.eup %1803 }
 0x9b7   :  { %v1806_v12 = vpop.eup %1805  ;;  %v762_v13 = vadd.f32 1.0, %v1804_v4 }
 0x9b8   :  { %v735_v14 = vadd.f32 1.0, %v1806_v12 }
 0x9b9   :  { %1807 = vrcp.f32 %v762_v13 }
 0x9ba   :  { %1809 = vrcp.f32 %v735_v14 }
 0x9c3   :  { %v1808_v46 = vpop.eup %1807 }
 0x9c4   :  { %v1810_v15 = vpop.eup %1809  ;;  %v769_v25 = vmul.f32 %v1808_v46, %v767_v22 }
 0x9c5   :  { %v742_v29 = vmul.f32 %v1810_v15, %v740_v24 }
 0xa27   :  { %v772_v50 = vpop.permute.xlu0 %771 }
 0xa28   :  { %v774_v18 = vmul.f32 %v1808_v46, %v772_v50  ;;  %v745_v19 = vpop.permute.xlu1 %744 }
 0xa29   :  { %v747_v20 = vmul.f32 %v1810_v15, %v745_v19 }
 0xa2a   :  { %776 = vrot.lane.b32.xlu0 %v774_v18, %s2054_s5 }
 0xa2b   :  { %749 = vrot.lane.b32.xlu1 %v747_v20, %s2054_s5 }
 0xa9c   :  { %v777_v26 = vpop.permute.xlu0 %776 }
 0xa9d   :  { %v2342_v30 = vadd.f32 %v777_v26, %v769_v25  ;;  %v750_v31 = vpop.permute.xlu1 %749 }
 0xa9e   :  { %v752_v33 = vadd.f32 %v750_v31, %v742_v29 }
 0xa9f   :  { %1811 = vtanh.f32 %v2342_v30  ;;  %v911_v13 = vrot.slane %v2342_v30, 2 }
 0xaa0   :  { %1813 = vtanh.f32 %v752_v33  ;;  %v884_v4 = vrot.slane %v752_v33, 6 }
 0xaa9   :  { %v1812_v34 = vpop.eup %1811 }
 0xaaa   :  { %v1814_v35 = vpop.eup %1813  ;;  %782 = vrot.lane.b32.xlu0 %v1812_v34, %s2054_s5 }
 0xaab   :  { %755 = vrot.lane.b32.xlu1 %v1814_v35, %s2054_s5 }
 0xb1c   :  { %v783_v36 = vpop.permute.xlu0 %782 }
 0xb1d   :  { %v2347_v37 = vmul.f32 %v1808_v46, %v783_v36  ;;  %v756_v38 = vpop.permute.xlu1 %755 }
 0xb1e   :  { %v758_v39 = vmul.f32 %v1810_v15, %v756_v38 }
 0xb1f   :  { %v791_v40 = vrot.slane %v2347_v37, 2 }
 0xb20   :  { %787 = vrot.lane.b32.xlu0 %v758_v39, %s2056_s0 }
 0xb21   :  { %792 = vrot.lane.b32.xlu1 %v791_v40, %s2055_s23 }
 0xb92   :  { %v2352_v42 = vpop.permute.xlu0 %787 }
 0xb93   :  { %v793_v43 = vpop.permute.xlu1 %792 }
 0xb94   :  { %v795_v45 = vsel %vm357_vm1, %v2352_v42, %v793_v43 }
 0xb95   :  { %v797_v47 = vrot.slane %v795_v45, 6 }
 0xb97   :  { %1544 = vmatmul.mubr.msk.f32.vlgmr.msra.gmra.mrb[4].mxu1 %vm220_vm2, %v797_v47 }
 0xb98   :  { %1691 = vmatpush1.bf16.msra.mxu1 %v2181_v8  ;;  %1154 = vmatprep.mubr.f32.mxu1 %v2053_v0 }
 0xb99   :  { %1693 = vmatprep.subr.bf16.mxu1 %v2183_v9 }
 0xb9c   :  { %1695 = vmatpush1.bf16.msra.mxu1 %v2187_v16 }
 0xb9d   :  { %1697 = vmatprep.subr.bf16.mxu1 %v2190_v21 }
 0xba0   :  { %1699 = vmatpush1.bf16.msra.mxu1 %v2193_v27 }
 0xba1   :  { %1701 = vmatprep.subr.bf16.mxu1 %v2197_v28 }
 0xba4   :  { %1703 = vmatpush1.bf16.msra.mxu1 %v2203_v32 }
 0xc6a   :  { %v866_v48 = vpop.f32.mrb[4].mxu1 }
 0xc6b   :  { %v871_v49 = vadd.f32 %v866_v48, %v2229_v44  ;;  %v868_v51 = vpop.f32.mrb[5].mxu1 }
 0xc6c   :  { %v873_v52 = vrot.slane %v868_v51, 2 }
 0xc6d   :  { %1815 = vtanh.f32 %v871_v49  ;;  %v1545_v58 = vmul.f32 -1.442695, %v871_v49 }
 0xc6e   :  { %v875_v53 = vadd.f32 %v873_v52, %v2227_v41 }
 0xc70   :  { %1817 = vtanh.f32 %v875_v53  ;;  %v1546_v59 = vmul.f32 -1.442695, %v875_v53 }
 0xc71   :  { %1819 = vpow2.f32 %v1545_v58 }
 0xc72   :  { %1821 = vpow2.f32 %v1546_v59 }
 0xc77   :  { %v1816_v54 = vpop.eup %1815 }
 0xc78   :  { %888 = vrot.lane.b32.xlu1 %v1816_v54, %s2054_s5 }
 0xc7a   :  { %v1818_v56 = vpop.eup %1817 }
 0xc7b   :  { %915 = vrot.lane.b32.xlu0 %v1818_v56, %s2054_s5  ;;  %v1820_v60 = vpop.eup %1819 }
 0xc7c   :  { %v1822_v61 = vpop.eup %1821  ;;  %v879_v62 = vadd.f32 1.0, %v1820_v60 }
 0xc7d   :  { %v906_v63 = vadd.f32 1.0, %v1822_v61 }
 0xc7e   :  { %1823 = vrcp.f32 %v879_v62 }
 0xc7f   :  { %1825 = vrcp.f32 %v906_v63 }
 0xc88   :  { %v1824_v1 = vpop.eup %1823 }
 0xc89   :  { %v1826_v7 = vpop.eup %1825  ;;  %v886_v12 = vmul.f32 %v1824_v1, %v884_v4 }
 0xc8a   :  { %v913_v50 = vmul.f32 %v1826_v7, %v911_v13 }
 0xcea   :  { %v889_v3 = vpop.permute.xlu1 %888 }
 0xceb   :  { %v891_v6 = vmul.f32 %v1824_v1, %v889_v3 }
 0xced   :  { %893 = vrot.lane.b32.xlu1 %v891_v6, %s2054_s5  ;;  %v916_v10 = vpop.permute.xlu0 %915 }
 0xcee   :  { %v918_v11 = vmul.f32 %v1826_v7, %v916_v10 }
 0xcf0   :  { %920 = vrot.lane.b32.xlu0 %v918_v11, %s2054_s5 }
 0xd5f   :  { %v894_v14 = vpop.permute.xlu1 %893 }
 0xd60   :  { %v896_v46 = vadd.f32 %v894_v14, %v886_v12 }
 0xd62   :  { %1827 = vtanh.f32 %v896_v46  ;;  %v921_v15 = vpop.permute.xlu0 %920  ;;  %v1030_v52 = vrot.slane %v896_v46, 6 }
 0xd63   :  { %v923_v18 = vadd.f32 %v921_v15, %v913_v50 }
 0xd65   :  { %1829 = vtanh.f32 %v923_v18  ;;  %v1057_v53 = vrot.slane %v923_v18, 2 }
 0xd6c   :  { %v1828_v19 = vpop.eup %1827 }
 0xd6d   :  { %899 = vrot.lane.b32.xlu1 %v1828_v19, %s2054_s5 }
 0xd6f   :  { %v1830_v20 = vpop.eup %1829 }
 0xd70   :  { %926 = vrot.lane.b32.xlu0 %v1830_v20, %s2054_s5 }
 0xddf   :  { %v900_v22 = vpop.permute.xlu1 %899 }
 0xde0   :  { %v902_v24 = vmul.f32 %v1824_v1, %v900_v22 }
 0xde2   :  { %931 = vrot.lane.b32.xlu0 %v902_v24, %s2056_s0  ;;  %v927_v25 = vpop.permute.xlu0 %926 }
 0xde3   :  { %v2375_v26 = vmul.f32 %v1826_v7, %v927_v25 }
 0xde5   :  { %v935_v29 = vrot.slane %v2375_v26, 6 }
 0xde7   :  { %936 = vrot.lane.b32.xlu1 %v935_v29, %s2055_s23 }
 0xe54   :  { %v2379_v30 = vpop.permute.xlu0 %931 }
 0xe59   :  { %v937_v31 = vpop.permute.xlu1 %936 }
 0xe5a   :  { %v939_v33 = vsel %vm357_vm1, %v2379_v30, %v937_v31 }
 0xe5b   :  { %1547 = vmatmul.mubr.msk.f32.vlgmr.msra.gmra.mrb[8].mxu0 %vm220_vm2, %v939_v33 }
 0xe5c   :  { %1707 = vmatpush1.bf16.msra.mxu0 %v2181_v8  ;;  %1301 = vmatprep.mubr.f32.mxu0 %v2053_v0 }
 0xe5d   :  { %1709 = vmatprep.subr.bf16.mxu0 %v2183_v9 }
 0xe60   :  { %1711 = vmatpush1.bf16.msra.mxu0 %v2187_v16 }
 0xe61   :  { %1713 = vmatprep.subr.bf16.mxu0 %v2190_v21 }
 0xe64   :  { %1715 = vmatpush1.bf16.msra.mxu0 %v2193_v27 }
 0xe65   :  { %1717 = vmatprep.subr.bf16.mxu0 %v2197_v28 }
 0xe68   :  { %1719 = vmatpush1.bf16.msra.mxu0 %v2203_v32 }
 0xf2e   :  { %v1009_v34 = vpop.f32.mrb[8].mxu0 }
 0xf2f   :  { %v1015_v35 = vrot.slane %v1009_v34, 6  ;;  %v1011_v36 = vpop.f32.mrb[9].mxu0 }
 0xf30   :  { %v1019_v38 = vrot.slane %v1011_v36, 4 }
 0xf31   :  { %v1017_v8 = vadd.f32 %v1015_v35, %v2229_v44 }
 0xf32   :  { %v1021_v0 = vadd.f32 %v1019_v38, %v2227_v41 }
 0xf33   :  { %1831 = vtanh.f32 %v1017_v8  ;;  %v1548_v21 = vmul.f32 -1.442695, %v1017_v8 }
 0xf34   :  { %1833 = vtanh.f32 %v1021_v0  ;;  %v1549_v27 = vmul.f32 -1.442695, %v1021_v0 }
 0xf35   :  { %1835 = vpow2.f32 %v1548_v21 }
 0xf36   :  { %1837 = vpow2.f32 %v1549_v27 }
 0xf3d   :  { %v1832_v9 = vpop.eup %1831 }
 0xf3e   :  { %v1834_v16 = vpop.eup %1833  ;;  %1034 = vrot.lane.b32.xlu1 %v1832_v9, %s2054_s5 }
 0xf3f   :  { %1061 = vrot.lane.b32.xlu0 %v1834_v16, %s2054_s5  ;;  %v1836_v28 = vpop.eup %1835 }
 0xf40   :  { %v1838_v32 = vpop.eup %1837  ;;  %v1025_v39 = vadd.f32 1.0, %v1836_v28 }
 0xf41   :  { %v1052_v40 = vadd.f32 1.0, %v1838_v32 }
 0xf42   :  { %1839 = vrcp.f32 %v1025_v39 }
 0xf43   :  { %1841 = vrcp.f32 %v1052_v40 }
 0xf4c   :  { %v1840_v43 = vpop.eup %1839 }
 0xf4d   :  { %v1842_v47 = vpop.eup %1841  ;;  %v1032_v54 = vmul.f32 %v1840_v43, %v1030_v52 }
 0xf4e   :  { %v1059_v58 = vmul.f32 %v1842_v47, %v1057_v53 }
 0xfb0   :  { %v1035_v45 = vpop.permute.xlu1 %1034 }
 0xfb1   :  { %v1037_v48 = vmul.f32 %v1840_v43, %v1035_v45  ;;  %v1062_v49 = vpop.permute.xlu0 %1061 }
 0xfb2   :  { %v1064_v51 = vmul.f32 %v1842_v47, %v1062_v49 }
 0xfb3   :  { %1039 = vrot.lane.b32.xlu1 %v1037_v48, %s2054_s5 }
 0xfb4   :  { %1066 = vrot.lane.b32.xlu0 %v1064_v51, %s2054_s5 }
0x1025   :  { %v1040_v56 = vpop.permute.xlu1 %1039 }
0x1026   :  { %v1042_v59 = vadd.f32 %v1040_v56, %v1032_v54  ;;  %v1067_v60 = vpop.permute.xlu0 %1066 }
0x1027   :  { %v1069_v61 = vadd.f32 %v1067_v60, %v1059_v58 }
0x1028   :  { %1843 = vtanh.f32 %v1042_v59  ;;  %v1177_v16 = vrot.slane %v1042_v59, 6 }
0x1029   :  { %1845 = vtanh.f32 %v1069_v61  ;;  %v1204_v21 = vrot.slane %v1069_v61, 2 }
0x1032   :  { %v1844_v62 = vpop.eup %1843 }
0x1033   :  { %v1846_v63 = vpop.eup %1845  ;;  %1045 = vrot.lane.b32.xlu1 %v1844_v62, %s2054_s5 }
0x1034   :  { %1072 = vrot.lane.b32.xlu0 %v1846_v63, %s2054_s5 }
0x10a5   :  { %v1046_v1 = vpop.permute.xlu1 %1045 }
0x10a6   :  { %v1048_v3 = vmul.f32 %v1840_v43, %v1046_v1  ;;  %v1073_v6 = vpop.permute.xlu0 %1072 }
0x10a7   :  { %v2400_v7 = vmul.f32 %v1842_v47, %v1073_v6 }
0x10a8   :  { %1077 = vrot.lane.b32.xlu0 %v1048_v3, %s2056_s0 }
0x10a9   :  { %v1081_v10 = vrot.slane %v2400_v7, 2 }
0x10ab   :  { %1082 = vrot.lane.b32.xlu1 %v1081_v10, %s2055_s23 }
0x111a   :  { %v2405_v11 = vpop.permute.xlu0 %1077 }
0x111d   :  { %v1083_v4 = vpop.permute.xlu1 %1082 }
0x111e   :  { %v1085_v12 = vsel %vm357_vm1, %v2405_v11, %v1083_v4 }
0x111f   :  { %v1087_v13 = vrot.slane %v1085_v12, 2 }
0x1121   :  { %1550 = vmatmul.mubr.msk.f32.vlgmr.msra.gmra.mrb[6].mxu1 %vm220_vm2, %v1087_v13 }
0x11f4   :  { %v1156_v14 = vpop.f32.mrb[6].mxu1 }
0x11f5   :  { %v1162_v46 = vrot.slane %v1156_v14, 4  ;;  %v1158_v50 = vpop.f32.mrb[7].mxu1 }
0x11f6   :  { %v1166_v15 = vrot.slane %v1158_v50, 6 }
0x11f7   :  { %v1164_v18 = vadd.f32 %v1162_v46, %v2229_v44 }
0x11f8   :  { %v1168_v19 = vadd.f32 %v1166_v15, %v2227_v41 }
0x11f9   :  { %1847 = vtanh.f32 %v1164_v18  ;;  %v1551_v24 = vmul.f32 -1.442695, %v1164_v18 }
0x11fa   :  { %1849 = vtanh.f32 %v1168_v19  ;;  %v1552_v25 = vmul.f32 -1.442695, %v1168_v19 }
0x11fb   :  { %1851 = vpow2.f32 %v1551_v24 }
0x11fc   :  { %1853 = vpow2.f32 %v1552_v25 }
0x1203   :  { %v1848_v20 = vpop.eup %1847 }
0x1204   :  { %v1850_v22 = vpop.eup %1849  ;;  %1181 = vrot.lane.b32.xlu1 %v1848_v20, %s2054_s5 }
0x1205   :  { %1208 = vrot.lane.b32.xlu0 %v1850_v22, %s2054_s5  ;;  %v1852_v29 = vpop.eup %1851 }
0x1206   :  { %v1854_v31 = vpop.eup %1853  ;;  %v1172_v33 = vadd.f32 1.0, %v1852_v29 }
0x1207   :  { %v1199_v34 = vadd.f32 1.0, %v1854_v31 }
0x1208   :  { %1855 = vrcp.f32 %v1172_v33 }
0x1209   :  { %1857 = vrcp.f32 %v1199_v34 }
0x1212   :  { %v1856_v35 = vpop.eup %1855 }
0x1213   :  { %v1858_v38 = vpop.eup %1857  ;;  %v1179_v27 = vmul.f32 %v1856_v35, %v1177_v16  ;;  %v1416_v16 = vld [vmem:[#allocation10 + $0x18] sm:$0xff] }
0x1214   :  { %v1206_v32 = vmul.f32 %v1858_v38, %v1204_v21 }
0x1276   :  { %v1182_v36 = vpop.permute.xlu1 %1181 }
0x1277   :  { %v1184_v8 = vmul.f32 %v1856_v35, %v1182_v36  ;;  %v1209_v0 = vpop.permute.xlu0 %1208 }
0x1278   :  { %v1211_v9 = vmul.f32 %v1858_v38, %v1209_v0  ;;  %v1415_v0 = vld [vmem:[#allocation10 + $0x10] sm:$0xff] }
0x1279   :  { %1186 = vrot.lane.b32.xlu1 %v1184_v8, %s2054_s5  ;;  %v1414_v8 = vld [vmem:[#allocation10 + $0x8] sm:$0xff]  ;;  %v1724_v21 = vpack.c.bf16 %v1416_v16, %v1415_v0 }
0x127a   :  { %1213 = vrot.lane.b32.xlu0 %v1211_v9, %s2054_s5 }
0x12eb   :  { %v1187_v28 = vpop.permute.xlu1 %1186 }
0x12ec   :  { %v1189_v39 = vadd.f32 %v1187_v28, %v1179_v27  ;;  %v1214_v40 = vpop.permute.xlu0 %1213  ;;  %v1417_v27 = vld [vmem:[#allocation10 + $0x20] sm:$0xff]  ;;  %v1418_v28 = vld [vmem:[#allocation10 + $0x28] sm:$0xff] }
0x12ed   :  { %v1216_v43 = vadd.f32 %v1214_v40, %v1206_v32  ;;  %v1728_v32 = vpack.c.bf16 %v1418_v28, %v1417_v27 }
0x12ee   :  { %1859 = vtanh.f32 %v1189_v39  ;;  %v1321_v22 = vrot.slane %v1189_v39, 6  ;;  %v1420_v39 = vld [vmem:[#allocation10 + $0x38] sm:$0xff] }
0x12ef   :  { %1861 = vtanh.f32 %v1216_v43  ;;  %v1348_v20 = vrot.slane %v1216_v43, 2 }
0x12f8   :  { %v1860_v45 = vpop.eup %1859 }
0x12f9   :  { %v1862_v47 = vpop.eup %1861  ;;  %1192 = vrot.lane.b32.xlu1 %v1860_v45, %s2054_s5 }
0x12fa   :  { %1219 = vrot.lane.b32.xlu0 %v1862_v47, %s2054_s5 }
0x136b   :  { %v1193_v48 = vpop.permute.xlu1 %1192 }
0x136c   :  { %v1195_v49 = vmul.f32 %v1856_v35, %v1193_v48  ;;  %v1220_v51 = vpop.permute.xlu0 %1219 }
0x136d   :  { %v1222_v52 = vmul.f32 %v1858_v38, %v1220_v51  ;;  %v1413_v38 = vld [vmem:[#allocation10] sm:$0xff] }
0x136e   :  { %1224 = vrot.lane.b32.xlu0 %v1195_v49, %s2056_s0  ;;  %v1720_v9 = vpack.c.bf16 %v1414_v8, %v1413_v38 }
0x136f   :  { %v1228_v53 = vrot.slane %v1222_v52, 6 }
0x1370   :  { %1721 = vmatprep.subr.bf16.mxu1 %v1720_v9 }
0x1371   :  { %1229 = vrot.lane.b32.xlu1 %v1228_v53, %s2055_s23  ;;  %1723 = vmatpush3.bf16.msra.mxu1 %v1720_v9 }
0x1372   :  { %1725 = vmatprep.subr.bf16.mxu1 %v1724_v21 }
0x1375   :  { %1727 = vmatpush3.bf16.msra.mxu1 %v1724_v21 }
0x1376   :  { %1729 = vmatprep.subr.bf16.mxu1 %v1728_v32 }
0x1379   :  { %1731 = vmatpush3.bf16.msra.mxu1 %v1728_v32 }
0x13e0   :  { %v2420_v54 = vpop.permute.xlu0 %1224 }
0x13e3   :  { %v1230_v56 = vpop.permute.xlu1 %1229 }
0x13e4   :  { %v1232_v58 = vsel %vm357_vm1, %v2420_v54, %v1230_v56 }
0x13e5   :  { %v1234_v59 = vrot.slane %v1232_v58, 4 }
0x13e7   :  { %1553 = vmatmul.mubr.msk.f32.vlgmr.msra.gmra.mrb[10].mxu0 %vm220_vm2, %v1234_v59 }
0x14ba   :  { %v1303_v60 = vpop.f32.mrb[10].mxu0 }
0x14bb   :  { %v1309_v61 = vrot.slane %v1303_v60, 2  ;;  %v1305_v62 = vpop.f32.mrb[11].mxu0 }
0x14bc   :  { %v1312_v63 = vadd.f32 %v1305_v62, %v2227_v41 }
0x14bd   :  { %v1311_v1 = vadd.f32 %v1309_v61, %v2229_v44 }
0x14be   :  { %1863 = vtanh.f32 %v1312_v63  ;;  %v1555_v10 = vmul.f32 -1.442695, %v1312_v63 }
0x14bf   :  { %1865 = vtanh.f32 %v1311_v1  ;;  %v1554_v4 = vmul.f32 -1.442695, %v1311_v1 }
0x14c0   :  { %1867 = vpow2.f32 %v1555_v10 }
0x14c1   :  { %1869 = vpow2.f32 %v1554_v4 }
0x14c8   :  { %v1864_v3 = vpop.eup %1863 }
0x14c9   :  { %v1866_v6 = vpop.eup %1865  ;;  %1352 = vrot.lane.b32.xlu0 %v1864_v3, %s2054_s5 }
0x14ca   :  { %1325 = vrot.lane.b32.xlu1 %v1866_v6, %s2054_s5  ;;  %v1868_v12 = vpop.eup %1867 }
0x14cb   :  { %v1870_v13 = vpop.eup %1869  ;;  %v1343_v14 = vadd.f32 1.0, %v1868_v12 }
0x14cc   :  { %v1316_v46 = vadd.f32 1.0, %v1870_v13 }
0x14cd   :  { %1871 = vrcp.f32 %v1343_v14 }
0x14ce   :  { %1873 = vrcp.f32 %v1316_v46 }
0x14d7   :  { %v1872_v41 = vpop.eup %1871 }
0x14d8   :  { %v1874_v50 = vpop.eup %1873  ;;  %v1350_v24 = vmul.f32 %v1872_v41, %v1348_v20 }
0x14d9   :  { %v1323_v29 = vmul.f32 %v1874_v50, %v1321_v22 }
0x153b   :  { %v1353_v44 = vpop.permute.xlu0 %1352 }
0x153c   :  { %v1355_v15 = vmul.f32 %v1872_v41, %v1353_v44  ;;  %v1326_v18 = vpop.permute.xlu1 %1325 }
0x153d   :  { %v1328_v19 = vmul.f32 %v1874_v50, %v1326_v18 }
0x153e   :  { %1357 = vrot.lane.b32.xlu0 %v1355_v15, %s2054_s5 }
0x153f   :  { %1330 = vrot.lane.b32.xlu1 %v1328_v19, %s2054_s5 }
0x15b0   :  { %v1358_v25 = vpop.permute.xlu0 %1357 }
0x15b1   :  { %v1360_v31 = vadd.f32 %v1358_v25, %v1350_v24  ;;  %v1331_v33 = vpop.permute.xlu1 %1330 }
0x15b2   :  { %v1333_v34 = vadd.f32 %v1331_v33, %v1323_v29 }
0x15b3   :  { %1875 = vtanh.f32 %v1360_v31 }
0x15b4   :  { %1877 = vtanh.f32 %v1333_v34 }
0x15bd   :  { %v1876_v35 = vpop.eup %1875 }
0x15be   :  { %v1878_v36 = vpop.eup %1877  ;;  %1363 = vrot.lane.b32.xlu0 %v1876_v35, %s2054_s5 }
0x15bf   :  { %1336 = vrot.lane.b32.xlu1 %v1878_v36, %s2054_s5 }
0x15c2   :  { %1376 = vrot.lane.b32.xlu0 %v2400_v7, %s2055_s23  ;;  %v1419_v7 = vld [vmem:[#allocation10 + $0x30] sm:$0xff] }
0x15c3   :  { %1372 = vrot.lane.b32.xlu1 %v1222_v52, %s2055_s23  ;;  %v1732_v40 = vpack.c.bf16 %v1420_v39, %v1419_v7 }
0x15c5   :  { %1733 = vmatprep.subr.bf16.mxu1 %v1732_v40 }
0x15c6   :  { %1388 = vrot.lane.b32.xlu0 %v2316_v55, %s2055_s23  ;;  %1735 = vmatpush3.bf16.msra.mxu1 %v1732_v40 }
0x15c7   :  { %1384 = vrot.lane.b32.xlu1 %v2347_v37, %s2055_s23 }
0x15ca   :  { %1392 = vrot.lane.b32.xlu0 %v2284_v2, %s2055_s23 }
0x15cb   :  { %1380 = vrot.lane.b32.xlu1 %v2375_v26, %s2055_s23 }
0x1630   :  { %v1364_v43 = vpop.permute.xlu0 %1363 }
0x1631   :  { %v1366_v45 = vmul.f32 %v1872_v41, %v1364_v43  ;;  %v1337_v55 = vpop.permute.xlu1 %1336 }
0x1632   :  { %v1339_v47 = vmul.f32 %v1874_v50, %v1337_v55 }
0x1633   :  { %1368 = vrot.lane.b32.xlu0 %v1366_v45, %s2055_s23 }
0x1634   :  { %1397 = vrot.lane.b32.xlu1 %v1339_v47, %s2056_s0  ;;  %v1377_v2 = vpop.permute.xlu0 %1376 }
0x1635   :  { %v1373_v37 = vpop.permute.xlu1 %1372  ;;  %v1379_v59 = vsel %vm357_vm1, %v2321_v57, %v1377_v2 }
0x1636   :  { %v1375_v53 = vsel %vm357_vm1, %v2289_v5, %v1373_v37 }
0x1637   :  { %1400 = vrot.lane.b32.xlu0 %v2249_v17, %s2055_s23 }
0x1638   :  { %v1389_v48 = vpop.permute.xlu0 %1388 }
0x1639   :  { %v1385_v26 = vpop.permute.xlu1 %1384  ;;  %v1391_v56 = vsel %vm357_vm1, %v2405_v11, %v1389_v48 }
0x163a   :  { %v1387_v58 = vsel %vm357_vm1, %v2379_v30, %v1385_v26 }
0x163b   :  { %v1410_v63 = vsel %vm1404_vm3, %v1387_v58, %v1391_v56 }
0x163c   :  { %v1393_v49 = vpop.permute.xlu0 %1392 }
0x163d   :  { %v1381_v51 = vpop.permute.xlu1 %1380  ;;  %v1395_v60 = vsel %vm357_vm1, %v2420_v54, %v1393_v49  ;;  %v1556_v54 = vld [vmem:[#allocation11] ss:$0 sm:$0xff] }
0x163e   :  { %v1383_v5 = vsel %vm357_vm1, %v2352_v42, %v1381_v51  ;;  %v1411_v3 = vsel %vm1406_vm5, %v1410_v63, %v1395_v60 }
0x16a5   :  { %v1369_v52 = vpop.permute.xlu0 %1368 }
0x16a6   :  { %v1371_v17 = vsel %vm357_vm1, %v2254_v23, %v1369_v52  ;;  %v1398_v11 = vpop.permute.xlu1 %1397 }
0x16a7   :  { %v1405_v61 = vsel %vm1404_vm3, %v1371_v17, %v1375_v53 }
0x16a8   :  { %v1407_v62 = vsel %vm1406_vm5, %v1405_v61, %v1379_v59 }
0x16a9   :  { %v1401_v1 = vpop.permute.xlu0 %1400  ;;  %v1409_v30 = vsel %vm1408_vm4, %v1407_v62, %v1383_v5 }
0x16aa   :  { %v1403_v23 = vsel %vm357_vm1, %v1398_v11, %v1401_v1  ;;  %1585 = vmatprep.mubr.msk.f32.mxu1 %vm220_vm2, %v1409_v30 }
0x16ab   :  { %v1412_v57 = vsel %vm1408_vm4, %v1411_v3, %v1403_v23 }
0x16ac   :  { %1586 = vmatmul.mubr.msk.f32.vlgmr.msra.gmra.mrb[8].mxu1 %vm220_vm2, %v1412_v57 }
0x177f   :  { %v1587_v6 = vpop.f32.mrb[8].mxu1 }
0x1780   :  { %v1506_v42 = vadd.f32 %v1587_v6, %v1556_v54  ;;  %v1500_v10 = vpop.f32.mrb[9].mxu1 }
0x1781   :  { %v1501_v4 = vadd.f32 %v1556_v54, %v1500_v10 }
0x1782   :  { %1510 = vst.msk [vmem:[#allocation13 + $0x8] sm:$0xff] %vm120_vm0, %v1506_v42 }
0x1783   :  { %1509 = vst.msk [vmem:[#allocation13] sm:$0xff] %vm120_vm0, %v1501_v4 }
0x1784   :  { %2022 = shalt.err (!%p2019_p10)
}
0x1785   :  { %s2023_s28 = scalar_lea.hbm %s2490_s6, 256 }
0x1786   :  { %p2024_p11 = scmp.ne.s32.totalorder %s2490_s6, %s2023_s28  ;;  %p2027_p12 = scmp.lt.u32.totalorder %s2023_s28, %s2490_s6 }
0x1788   :  { %p2029_p13 = pnand %p2027_p12, %p2024_p11 }
0x178a   :  { %2032 = shalt.err (!%p2029_p13)
}
0x178b   :  { %1522 = dma.vmem_to_hbm [thread:$0]  %s1517_s24, 256, %s2490_s6, [#allocation4], %s2048_s3, %s2048_s3, %s2049_s10  }
0x178c   :  { %2041 = dma.done.wait [#allocation4], 256  }
0x178d   :  { %2042 = vsyncadd [#allocation4], 4294967040 }
0x178e   :  { %1526 = vsyncpa [#allocation3], 1 }
0x178f   :  { %1527 = vsyncpa [#allocation6], 1 }
0x1790   :  { %1528 = vsyncpa [#allocation9], 1 }
0x1791   :  { %1529 = vsyncpa [#allocation12], 1 }
0x1792   :  { %1530 = vsyncpa [#allocation4], 1 }

</bundles_post_ra>
